<compile_context>
chip_gen: v5e
topology: v5e:2x2
jax: 0.10.0
libtpu: 0.0.40
codegen_flags: <defaults>
</compile_context>

<pallas_src>
import functools
import math

import jax
import jax.numpy as jnp
from jax.experimental import pallas as pl
from jax.experimental.pallas import tpu as pltpu


# --------------------------------------------------------------------------
# Fused kernel: embed + num_layers encoder layers + pooling + MLP head
# --------------------------------------------------------------------------
def _fused_transformer_kernel(
        x_ref, pe_ref, w_in_ref, b_in_ref,
        wqkv_ref, bqkv_ref, wo_ref, bo_ref, g1_ref, be1_ref,
        w1_ref, b1_ref, w2_ref, b2_ref, g2_ref, be2_ref,
        wf1_ref, bf1_ref, wf2_ref, bf2_ref, wf3_ref, bf3_ref,
        o_ref,
        h_sc, attn_sc,
        *, nhead, eps):
    """One grid step = one (BB, L, D) batch block x one encoder layer."""
    l = pl.program_id(1)
    n_layers = pl.num_programs(1)
    BB, L, D = h_sc.shape
    dh = D // nhead
    scale = 1.0 / math.sqrt(dh)
    bf16 = jnp.bfloat16

    # ---- layer 0: Linear(1, D) input projection + positional encoding ----
    @pl.when(l == 0)
    def _():
        h_sc[...] = x_ref[...] * w_in_ref[...] + b_in_ref[...] + pe_ref[...]

    src = h_sc[...]                              # (BB, L, D) f32
    src2 = src.reshape(BB * L, D)                # leading-dim merge only
    src_b = src2.astype(bf16)

    # ---- fused QKV projection: (BB*L, D) @ (D, 3D) on the MXU ----
    qkv = jnp.dot(src_b, wqkv_ref[...],
                  preferred_element_type=jnp.float32) + bqkv_ref[...]
    q = qkv[:, 0 * D:1 * D].reshape(BB, L, D)
    k = qkv[:, 1 * D:2 * D].reshape(BB, L, D)
    v = qkv[:, 2 * D:3 * D].reshape(BB, L, D)

    # ---- multi-head attention; heads land in a (BB, L, D) scratch so the
    #      out-projection is a single K=D matmul ----
    for h in range(nhead):                       # static unrolled head loop
        lo = h * dh
        qh = q[:, :, lo:lo + dh].astype(bf16)
        kh = k[:, :, lo:lo + dh].astype(bf16)
        vh = v[:, :, lo:lo + dh].astype(bf16)
        s = jnp.einsum("bqd,bkd->bqk", qh, kh,
                       preferred_element_type=jnp.float32) * scale   # (BB, L, L)
        s = s - jnp.max(s, axis=-1, keepdims=True)
        p = jnp.exp(s)
        p = p * pl.reciprocal(jnp.sum(p, axis=-1, keepdims=True), approx=True)
        attn_sc[:, :, lo:lo + dh] = jnp.einsum(
            "bqk,bkd->bqd", p.astype(bf16), vh,
            preferred_element_type=jnp.float32)

    attn = attn_sc[...].reshape(BB * L, D).astype(bf16)
    attn_out = jnp.dot(attn, wo_ref[...],
                       preferred_element_type=jnp.float32) + bo_ref[...]

    # ---- add & LayerNorm 1 (f32) ----
    h1 = src2 + attn_out
    mu = jnp.mean(h1, axis=-1, keepdims=True)
    xc = h1 - mu
    var = jnp.mean(xc * xc, axis=-1, keepdims=True)
    h1 = xc * jax.lax.rsqrt(var + eps) * g1_ref[...] + be1_ref[...]

    # ---- feed-forward (ReLU) + add & LayerNorm 2 ----
    f = jnp.dot(h1.astype(bf16), w1_ref[...],
                preferred_element_type=jnp.float32) + b1_ref[...]
    f = jnp.maximum(f, 0.0)
    f2 = jnp.dot(f.astype(bf16), w2_ref[...],
                 preferred_element_type=jnp.float32) + b2_ref[...]
    h2 = h1 + f2
    mu2 = jnp.mean(h2, axis=-1, keepdims=True)
    xc2 = h2 - mu2
    var2 = jnp.mean(xc2 * xc2, axis=-1, keepdims=True)
    h_new = xc2 * jax.lax.rsqrt(var2 + eps) * g2_ref[...] + be2_ref[...]
    h_sc[...] = h_new.reshape(BB, L, D)

    # ---- last layer: mean-pool over sequence + MLP head -> logits ----
    @pl.when(l == n_layers - 1)
    def _():
        pooled = jnp.mean(h_new.reshape(BB, L, D), axis=1)            # (BB, D)
        a = jnp.dot(pooled.astype(bf16), wf1_ref[...],
                    preferred_element_type=jnp.float32) + bf1_ref[...]
        a = jnp.maximum(a, 0.0)
        a = jnp.dot(a.astype(bf16), wf2_ref[...],
                    preferred_element_type=jnp.float32) + bf2_ref[...]
        a = jnp.maximum(a, 0.0)
        o_ref[...] = (jnp.dot(a.astype(bf16), wf3_ref[...],
                              preferred_element_type=jnp.float32)
                      + bf3_ref[...]).astype(o_ref.dtype)


# --------------------------------------------------------------------------
# Wrapper
# --------------------------------------------------------------------------
def _pick_batch_block(B):
    if B <= 8:
        return B
    for bb in range(min(B, 64), 7, -1):       # multiple of 8 that divides B
        if B % bb == 0 and bb % 8 == 0:
            return bb
    return B


def transformer_forward(x, params, *, nhead, batch_block=None):
    """x: (B, 1, L) float32 (PyTorch NCL layout). Returns (B, num_classes) logits."""
    B, _, L = x.shape
    D = params["w_in"].shape[1]
    F = params["layers"][0]["w1"].shape[1]
    NL = len(params["layers"])
    H1 = params["w_fc1"].shape[1]
    H2 = params["w_fc2"].shape[1]
    C = params["w_fc3"].shape[1]
    assert D % nhead == 0

    BB = batch_block or _pick_batch_block(B)
    assert B % BB == 0 and (BB == B or BB % 8 == 0)

    x_col = jnp.transpose(x, (0, 2, 1))                       # (B, L, 1), glue only
    pe = params["pe"][:L]
    bf16 = jnp.bfloat16
    layers = params["layers"]

    # Stack per-layer weights on a leading layer axis (streamed via the grid).
    wqkv = jnp.stack([jnp.concatenate([lp["wq"], lp["wk"], lp["wv"]], axis=1)
                      for lp in layers]).astype(bf16)          # (NL, D, 3D)
    bqkv = jnp.stack([jnp.concatenate([lp["bq"], lp["bk"], lp["bv"]], axis=1)
                      for lp in layers])                       # (NL, 1, 3D)
    wo = jnp.stack([lp["wo"] for lp in layers]).astype(bf16)
    bo = jnp.stack([lp["bo"] for lp in layers])
    g1 = jnp.stack([lp["g1"] for lp in layers])
    be1 = jnp.stack([lp["be1"] for lp in layers])
    w1 = jnp.stack([lp["w1"] for lp in layers]).astype(bf16)
    b1 = jnp.stack([lp["b1"] for lp in layers])
    w2 = jnp.stack([lp["w2"] for lp in layers]).astype(bf16)
    b2 = jnp.stack([lp["b2"] for lp in layers])
    g2 = jnp.stack([lp["g2"] for lp in layers])
    be2 = jnp.stack([lp["be2"] for lp in layers])

    def const(shape):
        return pl.BlockSpec(shape, lambda b, l: (0,) * len(shape))

    def per_layer(shape):
        return pl.BlockSpec((None,) + shape, lambda b, l: (l, 0, 0))

    in_specs = [
        pl.BlockSpec((BB, L, 1), lambda b, l: (b, 0, 0)),     # x (fetched once per b)
        const((L, D)),                                        # pe
        const((1, D)), const((1, D)),                         # w_in, b_in
        per_layer((D, 3 * D)), per_layer((1, 3 * D)),         # wqkv, bqkv
        per_layer((D, D)), per_layer((1, D)),                 # wo, bo
        per_layer((1, D)), per_layer((1, D)),                 # ln1 gamma/beta
        per_layer((D, F)), per_layer((1, F)),                 # ffn w1, b1
        per_layer((F, D)), per_layer((1, D)),                 # ffn w2, b2
        per_layer((1, D)), per_layer((1, D)),                 # ln2 gamma/beta
        const((D, H1)), const((1, H1)),                       # fc1
        const((H1, H2)), const((1, H2)),                      # fc2
        const((H2, C)), const((1, C)),                        # fc3
    ]

    out = pl.pallas_call(
        functools.partial(_fused_transformer_kernel, nhead=nhead, eps=1e-5),
        out_shape=jax.ShapeDtypeStruct((B, C), jnp.float32),
        grid=(B // BB, NL),
        in_specs=in_specs,
        out_specs=pl.BlockSpec((BB, C), lambda b, l: (b, 0)),
        scratch_shapes=[pltpu.VMEM((BB, L, D), jnp.float32),   # resident activation
                        pltpu.VMEM((BB, L, D), jnp.float32)],  # head-concat scratch
        compiler_params=pltpu.CompilerParams(
            dimension_semantics=("parallel", "arbitrary"),
            # 64 MiB is fine on v5e/v6e; keep <= ~48 MiB if tuning for v7x.
            vmem_limit_bytes=64 * 1024 * 1024),
    )(x_col, pe, params["w_in"], params["b_in"],
      wqkv, bqkv, wo, bo, g1, be1, w1, b1, w2, b2, g2, be2,
      params["w_fc1"].astype(bf16), params["b_fc1"],
      params["w_fc2"].astype(bf16), params["b_fc2"],
      params["w_fc3"].astype(bf16), params["b_fc3"])
    return out


# --------------------------------------------------------------------------
# Parameters / positional encoding
# --------------------------------------------------------------------------
def _positional_encoding(max_len, d_model):
    position = jnp.arange(max_len, dtype=jnp.float32)[:, None]
    div_term = jnp.exp(jnp.arange(0, d_model, 2, dtype=jnp.float32)
                       * (-math.log(10000.0) / d_model))
    ang = position * div_term
    pe = jnp.zeros((max_len, d_model), jnp.float32)
    pe = pe.at[:, 0::2].set(jnp.sin(ang))
    pe = pe.at[:, 1::2].set(jnp.cos(ang))
    return pe


def _make_params(key, *, d_model, nhead, num_layers, d_ff, num_classes, input_length):
    del nhead  # head split is shape-only
    keys = jax.random.split(key, 4 + num_layers)

    def lin(k, fan_in, fan_out):
        kw, kb = jax.random.split(k)
        s = 1.0 / math.sqrt(fan_in)
        w = jax.random.uniform(kw, (fan_in, fan_out), jnp.float32, -s, s)
        b = jax.random.uniform(kb, (1, fan_out), jnp.float32, -s, s)
        return w, b

    w_in, b_in = lin(keys[0], 1, d_model)
    w_fc1, b_fc1 = lin(keys[1], d_model, 128)
    w_fc2, b_fc2 = lin(keys[2], 128, 64)
    w_fc3, b_fc3 = lin(keys[3], 64, num_classes)

    layers = []
    for i in range(num_layers):
        lk = jax.random.split(keys[4 + i], 10)
        wq, bq = lin(lk[0], d_model, d_model)
        wk, bk = lin(lk[1], d_model, d_model)
        wv, bv = lin(lk[2], d_model, d_model)
        wo, bo = lin(lk[3], d_model, d_model)
        w1, b1 = lin(lk[4], d_model, d_ff)
        w2, b2 = lin(lk[5], d_ff, d_model)
        layers.append(dict(
            wq=wq, wk=wk, wv=wv, bq=bq, bk=bk, bv=bv, wo=wo, bo=bo,
            g1=jax.random.uniform(lk[6], (1, d_model), jnp.float32, 0.5, 1.5),
            be1=0.1 * jax.random.normal(lk[7], (1, d_model), jnp.float32),
            w1=w1, b1=b1, w2=w2, b2=b2,
            g2=jax.random.uniform(lk[8], (1, d_model), jnp.float32, 0.5, 1.5),
            be2=0.1 * jax.random.normal(lk[9], (1, d_model), jnp.float32)))

    return dict(w_in=w_in, b_in=b_in, pe=_positional_encoding(input_length, d_model),
                layers=layers, w_fc1=w_fc1, b_fc1=b_fc1, w_fc2=w_fc2, b_fc2=b_fc2,
                w_fc3=w_fc3, b_fc3=b_fc3)


# --------------------------------------------------------------------------
# Pure-JAX reference (verification only, f32 end to end)
# --------------------------------------------------------------------------
def _ref_layernorm(x, g, b, eps=1e-5):
    mu = jnp.mean(x, axis=-1, keepdims=True)
    var = jnp.mean((x - mu) ** 2, axis=-1, keepdims=True)
    return (x - mu) * jax.lax.rsqrt(var + eps) * g + b


def _ref_encoder_layer(x, p, nhead):
    B, L, D = x.shape
    dh = D // nhead
    q = x @ p["wq"] + p["bq"]
    k = x @ p["wk"] + p["bk"]
    v = x @ p["wv"] + p["bv"]

    def split(t):
        return t.reshape(B, L, nhead, dh).transpose(0, 2, 1, 3)

    qh, kh, vh = split(q), split(k), split(v)
    s = jnp.einsum("bhld,bhmd->bhlm", qh, kh) / math.sqrt(dh)
    a = jax.nn.softmax(s, axis=-1)
    o = jnp.einsum("bhlm,bhmd->bhld", a, vh).transpose(0, 2, 1, 3).reshape(B, L, D)
    h1 = _ref_layernorm(x + o @ p["wo"] + p["bo"], p["g1"], p["be1"])
    f = jax.nn.relu(h1 @ p["w1"] + p["b1"])
    return _ref_layernorm(h1 + f @ p["w2"] + p["b2"], p["g2"], p["be2"])


def _ref_forward(x, params, nhead):
    B, _, L = x.shape
    h = jnp.transpose(x, (0, 2, 1))                              # (B, L, 1)
    h = h * params["w_in"] + params["b_in"] + params["pe"][None, :L, :]
    for lp in params["layers"]:
        h = _ref_encoder_layer(h, lp, nhead)
    pooled = jnp.mean(h, axis=1)
    a = jax.nn.relu(pooled @ params["w_fc1"] + params["b_fc1"])
    a = jax.nn.relu(a @ params["w_fc2"] + params["b_fc2"])
    return a @ params["w_fc3"] + params["b_fc3"]


# --------------------------------------------------------------------------
if __name__ == "__main__":
    key = jax.random.PRNGKey(0)
    # Small shapes consistent with the module: B=2, L(seq)=16, d_model=32,
    # nhead=4, num_layers=2, dim_feedforward=64, num_classes=5.
    B, L, D, H, NUM_LAYERS, D_FF, NUM_CLASSES = 2, 16, 32, 4, 2, 64, 5

    kx, kp = jax.random.split(key)
    x = jax.random.normal(kx, (B, 1, L), jnp.float32)            # (batch, 1 channel, length)
    params = _make_params(kp, d_model=D, nhead=H, num_layers=NUM_LAYERS,
                          d_ff=D_FF, num_classes=NUM_CLASSES, input_length=L)

    out = jax.block_until_ready(transformer_forward(x, params, nhead=H))
    ref = jax.block_until_ready(_ref_forward(x, params, H))
    assert out.shape == ref.shape == (B, NUM_CLASSES), (out.shape, ref.shape)
    # bf16 MXU operands + approx reciprocal -> slightly looser tolerance than f32.
    max_err = float(jnp.max(jnp.abs(out - ref)))
    assert jnp.allclose(out, ref, rtol=3e-2, atol=3e-2), max_err

    print("KERNEL_OK")
</pallas_src>

<mosaic_0001>
module attributes {stable_mosaic.version = 11 : i64} {
  func.func @_fused_transformer_kernel(%arg0: i32, %arg1: i32, %arg2: memref<2x16x1xf32, #tpu.memory_space<vmem>>, %arg3: memref<16x32xf32, #tpu.memory_space<vmem>>, %arg4: memref<1x32xf32, #tpu.memory_space<vmem>>, %arg5: memref<1x32xf32, #tpu.memory_space<vmem>>, %arg6: memref<1x32x96xbf16, #tpu.memory_space<vmem>>, %arg7: memref<1x1x96xf32, #tpu.memory_space<vmem>>, %arg8: memref<1x32x32xbf16, #tpu.memory_space<vmem>>, %arg9: memref<1x1x32xf32, #tpu.memory_space<vmem>>, %arg10: memref<1x1x32xf32, #tpu.memory_space<vmem>>, %arg11: memref<1x1x32xf32, #tpu.memory_space<vmem>>, %arg12: memref<1x32x64xbf16, #tpu.memory_space<vmem>>, %arg13: memref<1x1x64xf32, #tpu.memory_space<vmem>>, %arg14: memref<1x64x32xbf16, #tpu.memory_space<vmem>>, %arg15: memref<1x1x32xf32, #tpu.memory_space<vmem>>, %arg16: memref<1x1x32xf32, #tpu.memory_space<vmem>>, %arg17: memref<1x1x32xf32, #tpu.memory_space<vmem>>, %arg18: memref<32x128xbf16, #tpu.memory_space<vmem>>, %arg19: memref<1x128xf32, #tpu.memory_space<vmem>>, %arg20: memref<128x64xbf16, #tpu.memory_space<vmem>>, %arg21: memref<1x64xf32, #tpu.memory_space<vmem>>, %arg22: memref<64x5xbf16, #tpu.memory_space<vmem>>, %arg23: memref<1x5xf32, #tpu.memory_space<vmem>>, %arg24: memref<2x5xf32, #tpu.memory_space<vmem>>, %arg25: memref<2x16x32xf32, #tpu.memory_space<vmem>>, %arg26: memref<2x16x32xf32, #tpu.memory_space<vmem>>) attributes {dimension_semantics = [#tpu.dimension_semantics<parallel>, #tpu.dimension_semantics<arbitrary>], iteration_bounds = array<i64: 1, 2>, scalar_prefetch = 0 : i64, scratch_operands = 2 : i64, tpu.core_type = #tpu.core_type<tc>, window_params = [{transform_indices = @transform_0, window_bounds = array<i64: 2, 16, 1>}, {pipeline_mode = #tpu.pipeline_mode<synchronous>, transform_indices = @transform_1, window_bounds = array<i64: 16, 32>}, {pipeline_mode = #tpu.pipeline_mode<synchronous>, transform_indices = @transform_2, window_bounds = array<i64: 1, 32>}, {pipeline_mode = #tpu.pipeline_mode<synchronous>, transform_indices = @transform_3, window_bounds = array<i64: 1, 32>}, {transform_indices = @transform_4, window_bounds = array<i64: 1, 32, 96>}, {transform_indices = @transform_5, window_bounds = array<i64: 1, 1, 96>}, {transform_indices = @transform_6, window_bounds = array<i64: 1, 32, 32>}, {transform_indices = @transform_7, window_bounds = array<i64: 1, 1, 32>}, {transform_indices = @transform_8, window_bounds = array<i64: 1, 1, 32>}, {transform_indices = @transform_9, window_bounds = array<i64: 1, 1, 32>}, {transform_indices = @transform_10, window_bounds = array<i64: 1, 32, 64>}, {transform_indices = @transform_11, window_bounds = array<i64: 1, 1, 64>}, {transform_indices = @transform_12, window_bounds = array<i64: 1, 64, 32>}, {transform_indices = @transform_13, window_bounds = array<i64: 1, 1, 32>}, {transform_indices = @transform_14, window_bounds = array<i64: 1, 1, 32>}, {transform_indices = @transform_15, window_bounds = array<i64: 1, 1, 32>}, {pipeline_mode = #tpu.pipeline_mode<synchronous>, transform_indices = @transform_16, window_bounds = array<i64: 32, 128>}, {pipeline_mode = #tpu.pipeline_mode<synchronous>, transform_indices = @transform_17, window_bounds = array<i64: 1, 128>}, {pipeline_mode = #tpu.pipeline_mode<synchronous>, transform_indices = @transform_18, window_bounds = array<i64: 128, 64>}, {pipeline_mode = #tpu.pipeline_mode<synchronous>, transform_indices = @transform_19, window_bounds = array<i64: 1, 64>}, {pipeline_mode = #tpu.pipeline_mode<synchronous>, transform_indices = @transform_20, window_bounds = array<i64: 64, 5>}, {pipeline_mode = #tpu.pipeline_mode<synchronous>, transform_indices = @transform_21, window_bounds = array<i64: 1, 5>}, {transform_indices = @transform_22, window_bounds = array<i64: 2, 5>}]} {
    %c0_i32 = arith.constant 0 : i32
    %0 = arith.cmpi eq, %arg1, %c0_i32 : i32
    %1 = arith.extui %0 : i1 to i32
    %c0_i32_0 = arith.constant 0 : i32
    %2 = arith.cmpi ne, %1, %c0_i32_0 : i32
    scf.if %2 {
      %c0_89 = arith.constant 0 : index
      %c0_90 = arith.constant 0 : index
      %c0_91 = arith.constant 0 : index
      %190 = vector.load %arg2[%c0_89, %c0_90, %c0_91] : memref<2x16x1xf32, #tpu.memory_space<vmem>>, vector<2x16x1xf32>
      %c0_92 = arith.constant 0 : index
      %c0_93 = arith.constant 0 : index
      %191 = vector.load %arg4[%c0_92, %c0_93] : memref<1x32xf32, #tpu.memory_space<vmem>>, vector<1x32xf32>
      %192 = vector.shape_cast %191 : vector<1x32xf32> to vector<1x1x32xf32>
      %193 = vector.broadcast %190 : vector<2x16x1xf32> to vector<2x16x32xf32>
      %194 = vector.broadcast %192 : vector<1x1x32xf32> to vector<2x16x32xf32>
      %195 = arith.mulf %193, %194 : vector<2x16x32xf32>
      %c0_94 = arith.constant 0 : index
      %c0_95 = arith.constant 0 : index
      %196 = vector.load %arg5[%c0_94, %c0_95] : memref<1x32xf32, #tpu.memory_space<vmem>>, vector<1x32xf32>
      %197 = vector.shape_cast %196 : vector<1x32xf32> to vector<1x1x32xf32>
      %198 = vector.broadcast %197 : vector<1x1x32xf32> to vector<2x16x32xf32>
      %199 = arith.addf %195, %198 : vector<2x16x32xf32>
      %c0_96 = arith.constant 0 : index
      %c0_97 = arith.constant 0 : index
      %200 = vector.load %arg3[%c0_96, %c0_97] : memref<16x32xf32, #tpu.memory_space<vmem>>, vector<16x32xf32>
      %201 = vector.shape_cast %200 : vector<16x32xf32> to vector<1x16x32xf32>
      %202 = vector.broadcast %201 : vector<1x16x32xf32> to vector<2x16x32xf32>
      %203 = arith.addf %199, %202 : vector<2x16x32xf32>
      %c0_98 = arith.constant 0 : index
      %c0_99 = arith.constant 0 : index
      %c0_100 = arith.constant 0 : index
      %204 = vector.load %arg25[%c0_98, %c0_99, %c0_100] : memref<2x16x32xf32, #tpu.memory_space<vmem>>, vector<2x16x32xf32>
      tpu.vector_store %arg25[%c0_98, %c0_99, %c0_100], %203 {strides = array<i32>} : memref<2x16x32xf32, #tpu.memory_space<vmem>>, vector<2x16x32xf32>,
    } else {
    }
    %c0 = arith.constant 0 : index
    %c0_1 = arith.constant 0 : index
    %c0_2 = arith.constant 0 : index
    %3 = vector.load %arg25[%c0, %c0_1, %c0_2] : memref<2x16x32xf32, #tpu.memory_space<vmem>>, vector<2x16x32xf32>
    %4 = vector.shape_cast %3 : vector<2x16x32xf32> to vector<32x32xf32>
    %5 = arith.truncf %4 : vector<32x32xf32> to vector<32x32xbf16>
    %c0_3 = arith.constant 0 : index
    %c0_4 = arith.constant 0 : index
    %c0_5 = arith.constant 0 : index
    %6 = vector.load %arg6[%c0_3, %c0_4, %c0_5] : memref<1x32x96xbf16, #tpu.memory_space<vmem>>, vector<1x32x96xbf16>
    %7 = vector.shape_cast %6 : vector<1x32x96xbf16> to vector<32x96xbf16>
    %cst = arith.constant dense<0.000000e+00> : vector<32x96xf32>
    %8 = tpu.matmul %5, %7, %cst {dimension_numbers = #tpu.dot_dimension_numbers<[1], [0], [0], [1], [0, 0, 1, 1], [], []>} : vector<32x32xbf16>, vector<32x96xbf16>, vector<32x96xf32> -> vector<32x96xf32>
    %c0_6 = arith.constant 0 : index
    %c0_7 = arith.constant 0 : index
    %c0_8 = arith.constant 0 : index
    %9 = vector.load %arg7[%c0_6, %c0_7, %c0_8] : memref<1x1x96xf32, #tpu.memory_space<vmem>>, vector<1x1x96xf32>
    %10 = vector.shape_cast %9 : vector<1x1x96xf32> to vector<1x96xf32>
    %11 = vector.broadcast %10 : vector<1x96xf32> to vector<32x96xf32>
    %12 = arith.addf %8, %11 : vector<32x96xf32>
    %13 = vector.extract_strided_slice %12 {offsets = [0, 0], sizes = [32, 32], strides = [1, 1]} : vector<32x96xf32> to vector<32x32xf32>
    %14 = vector.shape_cast %13 : vector<32x32xf32> to vector<2x16x32xf32>
    %15 = vector.extract_strided_slice %12 {offsets = [0, 32], sizes = [32, 32], strides = [1, 1]} : vector<32x96xf32> to vector<32x32xf32>
    %16 = vector.shape_cast %15 : vector<32x32xf32> to vector<2x16x32xf32>
    %17 = vector.extract_strided_slice %12 {offsets = [0, 64], sizes = [32, 32], strides = [1, 1]} : vector<32x96xf32> to vector<32x32xf32>
    %18 = vector.shape_cast %17 : vector<32x32xf32> to vector<2x16x32xf32>
    %19 = vector.extract_strided_slice %14 {offsets = [0, 0, 0], sizes = [2, 16, 8], strides = [1, 1, 1]} : vector<2x16x32xf32> to vector<2x16x8xf32>
    %20 = arith.truncf %19 : vector<2x16x8xf32> to vector<2x16x8xbf16>
    %21 = vector.extract_strided_slice %16 {offsets = [0, 0, 0], sizes = [2, 16, 8], strides = [1, 1, 1]} : vector<2x16x32xf32> to vector<2x16x8xf32>
    %22 = arith.truncf %21 : vector<2x16x8xf32> to vector<2x16x8xbf16>
    %23 = vector.extract_strided_slice %18 {offsets = [0, 0, 0], sizes = [2, 16, 8], strides = [1, 1, 1]} : vector<2x16x32xf32> to vector<2x16x8xf32>
    %24 = arith.truncf %23 : vector<2x16x8xf32> to vector<2x16x8xbf16>
    "tpu.trace_start"() <{level = 10 : i32, message = "bqd,bkd->bqk"}> : () -> ()
    %cst_9 = arith.constant dense<0.000000e+00> : vector<2x16x16xf32>
    %25 = tpu.matmul %20, %22, %cst_9 {dimension_numbers = #tpu.dot_dimension_numbers<[2], [2], [1], [1], [0, 0, 0, 1, 1, 1], [0], [0]>} : vector<2x16x8xbf16>, vector<2x16x8xbf16>, vector<2x16x16xf32> -> vector<2x16x16xf32>
    "tpu.trace_stop"() : () -> ()
    %cst_10 = arith.constant 0.353553385 : f32
    %26 = vector.broadcast %cst_10 : f32 to vector<2x16x16xf32>
    %27 = arith.mulf %25, %26 : vector<2x16x16xf32>
    %cst_11 = arith.constant dense<0xFF800000> : vector<2x16xf32>
    %28 = vector.multi_reduction <maximumf>, %27, %cst_11 [2] : vector<2x16x16xf32> to vector<2x16xf32>
    %29 = vector.shape_cast %28 : vector<2x16xf32> to vector<2x16x1xf32>
    %30 = vector.broadcast %29 : vector<2x16x1xf32> to vector<2x16x16xf32>
    %31 = arith.subf %27, %30 : vector<2x16x16xf32>
    %32 = math.exp %31 : vector<2x16x16xf32>
    %cst_12 = arith.constant dense<0.000000e+00> : vector<2x16xf32>
    %33 = vector.multi_reduction <add>, %32, %cst_12 [2] : vector<2x16x16xf32> to vector<2x16xf32>
    %34 = vector.shape_cast %33 : vector<2x16xf32> to vector<2x16x1xf32>
    %35 = tpu.reciprocal %34 {approx = true} : vector<2x16x1xf32> -> vector<2x16x1xf32>
    %36 = vector.broadcast %35 : vector<2x16x1xf32> to vector<2x16x16xf32>
    %37 = arith.mulf %32, %36 : vector<2x16x16xf32>
    %38 = arith.truncf %37 : vector<2x16x16xf32> to vector<2x16x16xbf16>
    "tpu.trace_start"() <{level = 10 : i32, message = "bqk,bkd->bqd"}> : () -> ()
    %cst_13 = arith.constant dense<0.000000e+00> : vector<2x16x8xf32>
    %39 = tpu.matmul %38, %24, %cst_13 {dimension_numbers = #tpu.dot_dimension_numbers<[2], [1], [1], [2], [0, 0, 0, 1, 1, 2], [0], [0]>} : vector<2x16x16xbf16>, vector<2x16x8xbf16>, vector<2x16x8xf32> -> vector<2x16x8xf32>
    "tpu.trace_stop"() : () -> ()
    %c0_14 = arith.constant 0 : index
    %c0_15 = arith.constant 0 : index
    %c0_16 = arith.constant 0 : index
    %40 = vector.load %arg26[%c0_14, %c0_15, %c0_16] : memref<2x16x32xf32, #tpu.memory_space<vmem>>, vector<2x16x8xf32>
    tpu.vector_store %arg26[%c0_14, %c0_15, %c0_16], %39 {strides = array<i32>} : memref<2x16x32xf32, #tpu.memory_space<vmem>>, vector<2x16x8xf32>,
    %41 = vector.extract_strided_slice %14 {offsets = [0, 0, 8], sizes = [2, 16, 8], strides = [1, 1, 1]} : vector<2x16x32xf32> to vector<2x16x8xf32>
    %42 = arith.truncf %41 : vector<2x16x8xf32> to vector<2x16x8xbf16>
    %43 = vector.extract_strided_slice %16 {offsets = [0, 0, 8], sizes = [2, 16, 8], strides = [1, 1, 1]} : vector<2x16x32xf32> to vector<2x16x8xf32>
    %44 = arith.truncf %43 : vector<2x16x8xf32> to vector<2x16x8xbf16>
    %45 = vector.extract_strided_slice %18 {offsets = [0, 0, 8], sizes = [2, 16, 8], strides = [1, 1, 1]} : vector<2x16x32xf32> to vector<2x16x8xf32>
    %46 = arith.truncf %45 : vector<2x16x8xf32> to vector<2x16x8xbf16>
    "tpu.trace_start"() <{level = 10 : i32, message = "bqd,bkd->bqk"}> : () -> ()
    %cst_17 = arith.constant dense<0.000000e+00> : vector<2x16x16xf32>
    %47 = tpu.matmul %42, %44, %cst_17 {dimension_numbers = #tpu.dot_dimension_numbers<[2], [2], [1], [1], [0, 0, 0, 1, 1, 1], [0], [0]>} : vector<2x16x8xbf16>, vector<2x16x8xbf16>, vector<2x16x16xf32> -> vector<2x16x16xf32>
    "tpu.trace_stop"() : () -> ()
    %cst_18 = arith.constant 0.353553385 : f32
    %48 = vector.broadcast %cst_18 : f32 to vector<2x16x16xf32>
    %49 = arith.mulf %47, %48 : vector<2x16x16xf32>
    %cst_19 = arith.constant dense<0xFF800000> : vector<2x16xf32>
    %50 = vector.multi_reduction <maximumf>, %49, %cst_19 [2] : vector<2x16x16xf32> to vector<2x16xf32>
    %51 = vector.shape_cast %50 : vector<2x16xf32> to vector<2x16x1xf32>
    %52 = vector.broadcast %51 : vector<2x16x1xf32> to vector<2x16x16xf32>
    %53 = arith.subf %49, %52 : vector<2x16x16xf32>
    %54 = math.exp %53 : vector<2x16x16xf32>
    %cst_20 = arith.constant dense<0.000000e+00> : vector<2x16xf32>
    %55 = vector.multi_reduction <add>, %54, %cst_20 [2] : vector<2x16x16xf32> to vector<2x16xf32>
    %56 = vector.shape_cast %55 : vector<2x16xf32> to vector<2x16x1xf32>
    %57 = tpu.reciprocal %56 {approx = true} : vector<2x16x1xf32> -> vector<2x16x1xf32>
    %58 = vector.broadcast %57 : vector<2x16x1xf32> to vector<2x16x16xf32>
    %59 = arith.mulf %54, %58 : vector<2x16x16xf32>
    %60 = arith.truncf %59 : vector<2x16x16xf32> to vector<2x16x16xbf16>
    "tpu.trace_start"() <{level = 10 : i32, message = "bqk,bkd->bqd"}> : () -> ()
    %cst_21 = arith.constant dense<0.000000e+00> : vector<2x16x8xf32>
    %61 = tpu.matmul %60, %46, %cst_21 {dimension_numbers = #tpu.dot_dimension_numbers<[2], [1], [1], [2], [0, 0, 0, 1, 1, 2], [0], [0]>} : vector<2x16x16xbf16>, vector<2x16x8xbf16>, vector<2x16x8xf32> -> vector<2x16x8xf32>
    "tpu.trace_stop"() : () -> ()
    %c0_22 = arith.constant 0 : index
    %c0_23 = arith.constant 0 : index
    %c8 = arith.constant 8 : index
    %62 = vector.load %arg26[%c0_22, %c0_23, %c8] : memref<2x16x32xf32, #tpu.memory_space<vmem>>, vector<2x16x8xf32>
    tpu.vector_store %arg26[%c0_22, %c0_23, %c8], %61 {strides = array<i32>} : memref<2x16x32xf32, #tpu.memory_space<vmem>>, vector<2x16x8xf32>,
    %63 = vector.extract_strided_slice %14 {offsets = [0, 0, 16], sizes = [2, 16, 8], strides = [1, 1, 1]} : vector<2x16x32xf32> to vector<2x16x8xf32>
    %64 = arith.truncf %63 : vector<2x16x8xf32> to vector<2x16x8xbf16>
    %65 = vector.extract_strided_slice %16 {offsets = [0, 0, 16], sizes = [2, 16, 8], strides = [1, 1, 1]} : vector<2x16x32xf32> to vector<2x16x8xf32>
    %66 = arith.truncf %65 : vector<2x16x8xf32> to vector<2x16x8xbf16>
    %67 = vector.extract_strided_slice %18 {offsets = [0, 0, 16], sizes = [2, 16, 8], strides = [1, 1, 1]} : vector<2x16x32xf32> to vector<2x16x8xf32>
    %68 = arith.truncf %67 : vector<2x16x8xf32> to vector<2x16x8xbf16>
    "tpu.trace_start"() <{level = 10 : i32, message = "bqd,bkd->bqk"}> : () -> ()
    %cst_24 = arith.constant dense<0.000000e+00> : vector<2x16x16xf32>
    %69 = tpu.matmul %64, %66, %cst_24 {dimension_numbers = #tpu.dot_dimension_numbers<[2], [2], [1], [1], [0, 0, 0, 1, 1, 1], [0], [0]>} : vector<2x16x8xbf16>, vector<2x16x8xbf16>, vector<2x16x16xf32> -> vector<2x16x16xf32>
    "tpu.trace_stop"() : () -> ()
    %cst_25 = arith.constant 0.353553385 : f32
    %70 = vector.broadcast %cst_25 : f32 to vector<2x16x16xf32>
    %71 = arith.mulf %69, %70 : vector<2x16x16xf32>
    %cst_26 = arith.constant dense<0xFF800000> : vector<2x16xf32>
    %72 = vector.multi_reduction <maximumf>, %71, %cst_26 [2] : vector<2x16x16xf32> to vector<2x16xf32>
    %73 = vector.shape_cast %72 : vector<2x16xf32> to vector<2x16x1xf32>
    %74 = vector.broadcast %73 : vector<2x16x1xf32> to vector<2x16x16xf32>
    %75 = arith.subf %71, %74 : vector<2x16x16xf32>
    %76 = math.exp %75 : vector<2x16x16xf32>
    %cst_27 = arith.constant dense<0.000000e+00> : vector<2x16xf32>
    %77 = vector.multi_reduction <add>, %76, %cst_27 [2] : vector<2x16x16xf32> to vector<2x16xf32>
    %78 = vector.shape_cast %77 : vector<2x16xf32> to vector<2x16x1xf32>
    %79 = tpu.reciprocal %78 {approx = true} : vector<2x16x1xf32> -> vector<2x16x1xf32>
    %80 = vector.broadcast %79 : vector<2x16x1xf32> to vector<2x16x16xf32>
    %81 = arith.mulf %76, %80 : vector<2x16x16xf32>
    %82 = arith.truncf %81 : vector<2x16x16xf32> to vector<2x16x16xbf16>
    "tpu.trace_start"() <{level = 10 : i32, message = "bqk,bkd->bqd"}> : () -> ()
    %cst_28 = arith.constant dense<0.000000e+00> : vector<2x16x8xf32>
    %83 = tpu.matmul %82, %68, %cst_28 {dimension_numbers = #tpu.dot_dimension_numbers<[2], [1], [1], [2], [0, 0, 0, 1, 1, 2], [0], [0]>} : vector<2x16x16xbf16>, vector<2x16x8xbf16>, vector<2x16x8xf32> -> vector<2x16x8xf32>
    "tpu.trace_stop"() : () -> ()
    %c0_29 = arith.constant 0 : index
    %c0_30 = arith.constant 0 : index
    %c16 = arith.constant 16 : index
    %84 = vector.load %arg26[%c0_29, %c0_30, %c16] : memref<2x16x32xf32, #tpu.memory_space<vmem>>, vector<2x16x8xf32>
    tpu.vector_store %arg26[%c0_29, %c0_30, %c16], %83 {strides = array<i32>} : memref<2x16x32xf32, #tpu.memory_space<vmem>>, vector<2x16x8xf32>,
    %85 = vector.extract_strided_slice %14 {offsets = [0, 0, 24], sizes = [2, 16, 8], strides = [1, 1, 1]} : vector<2x16x32xf32> to vector<2x16x8xf32>
    %86 = arith.truncf %85 : vector<2x16x8xf32> to vector<2x16x8xbf16>
    %87 = vector.extract_strided_slice %16 {offsets = [0, 0, 24], sizes = [2, 16, 8], strides = [1, 1, 1]} : vector<2x16x32xf32> to vector<2x16x8xf32>
    %88 = arith.truncf %87 : vector<2x16x8xf32> to vector<2x16x8xbf16>
    %89 = vector.extract_strided_slice %18 {offsets = [0, 0, 24], sizes = [2, 16, 8], strides = [1, 1, 1]} : vector<2x16x32xf32> to vector<2x16x8xf32>
    %90 = arith.truncf %89 : vector<2x16x8xf32> to vector<2x16x8xbf16>
    "tpu.trace_start"() <{level = 10 : i32, message = "bqd,bkd->bqk"}> : () -> ()
    %cst_31 = arith.constant dense<0.000000e+00> : vector<2x16x16xf32>
    %91 = tpu.matmul %86, %88, %cst_31 {dimension_numbers = #tpu.dot_dimension_numbers<[2], [2], [1], [1], [0, 0, 0, 1, 1, 1], [0], [0]>} : vector<2x16x8xbf16>, vector<2x16x8xbf16>, vector<2x16x16xf32> -> vector<2x16x16xf32>
    "tpu.trace_stop"() : () -> ()
    %cst_32 = arith.constant 0.353553385 : f32
    %92 = vector.broadcast %cst_32 : f32 to vector<2x16x16xf32>
    %93 = arith.mulf %91, %92 : vector<2x16x16xf32>
    %cst_33 = arith.constant dense<0xFF800000> : vector<2x16xf32>
    %94 = vector.multi_reduction <maximumf>, %93, %cst_33 [2] : vector<2x16x16xf32> to vector<2x16xf32>
    %95 = vector.shape_cast %94 : vector<2x16xf32> to vector<2x16x1xf32>
    %96 = vector.broadcast %95 : vector<2x16x1xf32> to vector<2x16x16xf32>
    %97 = arith.subf %93, %96 : vector<2x16x16xf32>
    %98 = math.exp %97 : vector<2x16x16xf32>
    %cst_34 = arith.constant dense<0.000000e+00> : vector<2x16xf32>
    %99 = vector.multi_reduction <add>, %98, %cst_34 [2] : vector<2x16x16xf32> to vector<2x16xf32>
    %100 = vector.shape_cast %99 : vector<2x16xf32> to vector<2x16x1xf32>
    %101 = tpu.reciprocal %100 {approx = true} : vector<2x16x1xf32> -> vector<2x16x1xf32>
    %102 = vector.broadcast %101 : vector<2x16x1xf32> to vector<2x16x16xf32>
    %103 = arith.mulf %98, %102 : vector<2x16x16xf32>
    %104 = arith.truncf %103 : vector<2x16x16xf32> to vector<2x16x16xbf16>
    "tpu.trace_start"() <{level = 10 : i32, message = "bqk,bkd->bqd"}> : () -> ()
    %cst_35 = arith.constant dense<0.000000e+00> : vector<2x16x8xf32>
    %105 = tpu.matmul %104, %90, %cst_35 {dimension_numbers = #tpu.dot_dimension_numbers<[2], [1], [1], [2], [0, 0, 0, 1, 1, 2], [0], [0]>} : vector<2x16x16xbf16>, vector<2x16x8xbf16>, vector<2x16x8xf32> -> vector<2x16x8xf32>
    "tpu.trace_stop"() : () -> ()
    %c0_36 = arith.constant 0 : index
    %c0_37 = arith.constant 0 : index
    %c24 = arith.constant 24 : index
    %106 = vector.load %arg26[%c0_36, %c0_37, %c24] : memref<2x16x32xf32, #tpu.memory_space<vmem>>, vector<2x16x8xf32>
    tpu.vector_store %arg26[%c0_36, %c0_37, %c24], %105 {strides = array<i32>} : memref<2x16x32xf32, #tpu.memory_space<vmem>>, vector<2x16x8xf32>,
    %c0_38 = arith.constant 0 : index
    %c0_39 = arith.constant 0 : index
    %c0_40 = arith.constant 0 : index
    %107 = vector.load %arg26[%c0_38, %c0_39, %c0_40] : memref<2x16x32xf32, #tpu.memory_space<vmem>>, vector<2x16x32xf32>
    %108 = vector.shape_cast %107 : vector<2x16x32xf32> to vector<32x32xf32>
    %109 = arith.truncf %108 : vector<32x32xf32> to vector<32x32xbf16>
    %c0_41 = arith.constant 0 : index
    %c0_42 = arith.constant 0 : index
    %c0_43 = arith.constant 0 : index
    %110 = vector.load %arg8[%c0_41, %c0_42, %c0_43] : memref<1x32x32xbf16, #tpu.memory_space<vmem>>, vector<1x32x32xbf16>
    %111 = vector.shape_cast %110 : vector<1x32x32xbf16> to vector<32x32xbf16>
    %cst_44 = arith.constant dense<0.000000e+00> : vector<32x32xf32>
    %112 = tpu.matmul %109, %111, %cst_44 {dimension_numbers = #tpu.dot_dimension_numbers<[1], [0], [0], [1], [0, 0, 1, 1], [], []>} : vector<32x32xbf16>, vector<32x32xbf16>, vector<32x32xf32> -> vector<32x32xf32>
    %c0_45 = arith.constant 0 : index
    %c0_46 = arith.constant 0 : index
    %c0_47 = arith.constant 0 : index
    %113 = vector.load %arg9[%c0_45, %c0_46, %c0_47] : memref<1x1x32xf32, #tpu.memory_space<vmem>>, vector<1x1x32xf32>
    %114 = vector.shape_cast %113 : vector<1x1x32xf32> to vector<1x32xf32>
    %115 = vector.broadcast %114 : vector<1x32xf32> to vector<32x32xf32>
    %116 = arith.addf %112, %115 : vector<32x32xf32>
    %117 = arith.addf %4, %116 : vector<32x32xf32>
    %cst_48 = arith.constant dense<0.000000e+00> : vector<32xf32>
    %118 = vector.multi_reduction <add>, %117, %cst_48 [1] : vector<32x32xf32> to vector<32xf32>
    %119 = vector.shape_cast %118 : vector<32xf32> to vector<32x1xf32>
    %cst_49 = arith.constant 3.200000e+01 : f32
    %120 = vector.broadcast %cst_49 : f32 to vector<32x1xf32>
    %121 = arith.divf %119, %120 : vector<32x1xf32>
    %122 = vector.broadcast %121 : vector<32x1xf32> to vector<32x32xf32>
    %123 = arith.subf %117, %122 : vector<32x32xf32>
    %124 = arith.mulf %123, %123 : vector<32x32xf32>
    %cst_50 = arith.constant dense<0.000000e+00> : vector<32xf32>
    %125 = vector.multi_reduction <add>, %124, %cst_50 [1] : vector<32x32xf32> to vector<32xf32>
    %126 = vector.shape_cast %125 : vector<32xf32> to vector<32x1xf32>
    %cst_51 = arith.constant 3.200000e+01 : f32
    %127 = vector.broadcast %cst_51 : f32 to vector<32x1xf32>
    %128 = arith.divf %126, %127 : vector<32x1xf32>
    %cst_52 = arith.constant 9.99999974E-6 : f32
    %129 = vector.broadcast %cst_52 : f32 to vector<32x1xf32>
    %130 = arith.addf %128, %129 : vector<32x1xf32>
    %131 = math.rsqrt %130 : vector<32x1xf32>
    %132 = vector.broadcast %131 : vector<32x1xf32> to vector<32x32xf32>
    %133 = arith.mulf %123, %132 : vector<32x32xf32>
    %c0_53 = arith.constant 0 : index
    %c0_54 = arith.constant 0 : index
    %c0_55 = arith.constant 0 : index
    %134 = vector.load %arg10[%c0_53, %c0_54, %c0_55] : memref<1x1x32xf32, #tpu.memory_space<vmem>>, vector<1x1x32xf32>
    %135 = vector.shape_cast %134 : vector<1x1x32xf32> to vector<1x32xf32>
    %136 = vector.broadcast %135 : vector<1x32xf32> to vector<32x32xf32>
    %137 = arith.mulf %133, %136 : vector<32x32xf32>
    %c0_56 = arith.constant 0 : index
    %c0_57 = arith.constant 0 : index
    %c0_58 = arith.constant 0 : index
    %138 = vector.load %arg11[%c0_56, %c0_57, %c0_58] : memref<1x1x32xf32, #tpu.memory_space<vmem>>, vector<1x1x32xf32>
    %139 = vector.shape_cast %138 : vector<1x1x32xf32> to vector<1x32xf32>
    %140 = vector.broadcast %139 : vector<1x32xf32> to vector<32x32xf32>
    %141 = arith.addf %137, %140 : vector<32x32xf32>
    %142 = arith.truncf %141 : vector<32x32xf32> to vector<32x32xbf16>
    %c0_59 = arith.constant 0 : index
    %c0_60 = arith.constant 0 : index
    %c0_61 = arith.constant 0 : index
    %143 = vector.load %arg12[%c0_59, %c0_60, %c0_61] : memref<1x32x64xbf16, #tpu.memory_space<vmem>>, vector<1x32x64xbf16>
    %144 = vector.shape_cast %143 : vector<1x32x64xbf16> to vector<32x64xbf16>
    %cst_62 = arith.constant dense<0.000000e+00> : vector<32x64xf32>
    %145 = tpu.matmul %142, %144, %cst_62 {dimension_numbers = #tpu.dot_dimension_numbers<[1], [0], [0], [1], [0, 0, 1, 1], [], []>} : vector<32x32xbf16>, vector<32x64xbf16>, vector<32x64xf32> -> vector<32x64xf32>
    %c0_63 = arith.constant 0 : index
    %c0_64 = arith.constant 0 : index
    %c0_65 = arith.constant 0 : index
    %146 = vector.load %arg13[%c0_63, %c0_64, %c0_65] : memref<1x1x64xf32, #tpu.memory_space<vmem>>, vector<1x1x64xf32>
    %147 = vector.shape_cast %146 : vector<1x1x64xf32> to vector<1x64xf32>
    %148 = vector.broadcast %147 : vector<1x64xf32> to vector<32x64xf32>
    %149 = arith.addf %145, %148 : vector<32x64xf32>
    %cst_66 = arith.constant 0.000000e+00 : f32
    %150 = vector.broadcast %cst_66 : f32 to vector<32x64xf32>
    %151 = arith.maximumf %149, %150 : vector<32x64xf32>
    %152 = arith.truncf %151 : vector<32x64xf32> to vector<32x64xbf16>
    %c0_67 = arith.constant 0 : index
    %c0_68 = arith.constant 0 : index
    %c0_69 = arith.constant 0 : index
    %153 = vector.load %arg14[%c0_67, %c0_68, %c0_69] : memref<1x64x32xbf16, #tpu.memory_space<vmem>>, vector<1x64x32xbf16>
    %154 = vector.shape_cast %153 : vector<1x64x32xbf16> to vector<64x32xbf16>
    %cst_70 = arith.constant dense<0.000000e+00> : vector<32x32xf32>
    %155 = tpu.matmul %152, %154, %cst_70 {dimension_numbers = #tpu.dot_dimension_numbers<[1], [0], [0], [1], [0, 0, 1, 1], [], []>} : vector<32x64xbf16>, vector<64x32xbf16>, vector<32x32xf32> -> vector<32x32xf32>
    %c0_71 = arith.constant 0 : index
    %c0_72 = arith.constant 0 : index
    %c0_73 = arith.constant 0 : index
    %156 = vector.load %arg15[%c0_71, %c0_72, %c0_73] : memref<1x1x32xf32, #tpu.memory_space<vmem>>, vector<1x1x32xf32>
    %157 = vector.shape_cast %156 : vector<1x1x32xf32> to vector<1x32xf32>
    %158 = vector.broadcast %157 : vector<1x32xf32> to vector<32x32xf32>
    %159 = arith.addf %155, %158 : vector<32x32xf32>
    %160 = arith.addf %141, %159 : vector<32x32xf32>
    %cst_74 = arith.constant dense<0.000000e+00> : vector<32xf32>
    %161 = vector.multi_reduction <add>, %160, %cst_74 [1] : vector<32x32xf32> to vector<32xf32>
    %162 = vector.shape_cast %161 : vector<32xf32> to vector<32x1xf32>
    %cst_75 = arith.constant 3.200000e+01 : f32
    %163 = vector.broadcast %cst_75 : f32 to vector<32x1xf32>
    %164 = arith.divf %162, %163 : vector<32x1xf32>
    %165 = vector.broadcast %164 : vector<32x1xf32> to vector<32x32xf32>
    %166 = arith.subf %160, %165 : vector<32x32xf32>
    %167 = arith.mulf %166, %166 : vector<32x32xf32>
    %cst_76 = arith.constant dense<0.000000e+00> : vector<32xf32>
    %168 = vector.multi_reduction <add>, %167, %cst_76 [1] : vector<32x32xf32> to vector<32xf32>
    %169 = vector.shape_cast %168 : vector<32xf32> to vector<32x1xf32>
    %cst_77 = arith.constant 3.200000e+01 : f32
    %170 = vector.broadcast %cst_77 : f32 to vector<32x1xf32>
    %171 = arith.divf %169, %170 : vector<32x1xf32>
    %cst_78 = arith.constant 9.99999974E-6 : f32
    %172 = vector.broadcast %cst_78 : f32 to vector<32x1xf32>
    %173 = arith.addf %171, %172 : vector<32x1xf32>
    %174 = math.rsqrt %173 : vector<32x1xf32>
    %175 = vector.broadcast %174 : vector<32x1xf32> to vector<32x32xf32>
    %176 = arith.mulf %166, %175 : vector<32x32xf32>
    %c0_79 = arith.constant 0 : index
    %c0_80 = arith.constant 0 : index
    %c0_81 = arith.constant 0 : index
    %177 = vector.load %arg16[%c0_79, %c0_80, %c0_81] : memref<1x1x32xf32, #tpu.memory_space<vmem>>, vector<1x1x32xf32>
    %178 = vector.shape_cast %177 : vector<1x1x32xf32> to vector<1x32xf32>
    %179 = vector.broadcast %178 : vector<1x32xf32> to vector<32x32xf32>
    %180 = arith.mulf %176, %179 : vector<32x32xf32>
    %c0_82 = arith.constant 0 : index
    %c0_83 = arith.constant 0 : index
    %c0_84 = arith.constant 0 : index
    %181 = vector.load %arg17[%c0_82, %c0_83, %c0_84] : memref<1x1x32xf32, #tpu.memory_space<vmem>>, vector<1x1x32xf32>
    %182 = vector.shape_cast %181 : vector<1x1x32xf32> to vector<1x32xf32>
    %183 = vector.broadcast %182 : vector<1x32xf32> to vector<32x32xf32>
    %184 = arith.addf %180, %183 : vector<32x32xf32>
    %185 = vector.shape_cast %184 : vector<32x32xf32> to vector<2x16x32xf32>
    %c0_85 = arith.constant 0 : index
    %c0_86 = arith.constant 0 : index
    %c0_87 = arith.constant 0 : index
    %186 = vector.load %arg25[%c0_85, %c0_86, %c0_87] : memref<2x16x32xf32, #tpu.memory_space<vmem>>, vector<2x16x32xf32>
    tpu.vector_store %arg25[%c0_85, %c0_86, %c0_87], %185 {strides = array<i32>} : memref<2x16x32xf32, #tpu.memory_space<vmem>>, vector<2x16x32xf32>,
    %c1_i32 = arith.constant 1 : i32
    %187 = arith.cmpi eq, %arg1, %c1_i32 : i32
    %188 = arith.extui %187 : i1 to i32
    %c0_i32_88 = arith.constant 0 : i32
    %189 = arith.cmpi ne, %188, %c0_i32_88 : i32
    scf.if %189 {
      %190 = vector.shape_cast %184 : vector<32x32xf32> to vector<2x16x32xf32>
      %cst_89 = arith.constant dense<0.000000e+00> : vector<2x32xf32>
      %191 = vector.multi_reduction <add>, %190, %cst_89 [1] : vector<2x16x32xf32> to vector<2x32xf32>
      %cst_90 = arith.constant 1.600000e+01 : f32
      %192 = vector.broadcast %cst_90 : f32 to vector<2x32xf32>
      %193 = arith.divf %191, %192 : vector<2x32xf32>
      %194 = arith.truncf %193 : vector<2x32xf32> to vector<2x32xbf16>
      %c0_91 = arith.constant 0 : index
      %c0_92 = arith.constant 0 : index
      %195 = vector.load %arg18[%c0_91, %c0_92] : memref<32x128xbf16, #tpu.memory_space<vmem>>, vector<32x128xbf16>
      %cst_93 = arith.constant dense<0.000000e+00> : vector<2x128xf32>
      %196 = tpu.matmul %194, %195, %cst_93 {dimension_numbers = #tpu.dot_dimension_numbers<[1], [0], [0], [1], [0, 0, 1, 1], [], []>} : vector<2x32xbf16>, vector<32x128xbf16>, vector<2x128xf32> -> vector<2x128xf32>
      %c0_94 = arith.constant 0 : index
      %c0_95 = arith.constant 0 : index
      %197 = vector.load %arg19[%c0_94, %c0_95] : memref<1x128xf32, #tpu.memory_space<vmem>>, vector<1x128xf32>
      %198 = vector.broadcast %197 : vector<1x128xf32> to vector<2x128xf32>
      %199 = arith.addf %196, %198 : vector<2x128xf32>
      %cst_96 = arith.constant 0.000000e+00 : f32
      %200 = vector.broadcast %cst_96 : f32 to vector<2x128xf32>
      %201 = arith.maximumf %199, %200 : vector<2x128xf32>
      %202 = arith.truncf %201 : vector<2x128xf32> to vector<2x128xbf16>
      %c0_97 = arith.constant 0 : index
      %c0_98 = arith.constant 0 : index
      %203 = vector.load %arg20[%c0_97, %c0_98] : memref<128x64xbf16, #tpu.memory_space<vmem>>, vector<128x64xbf16>
      %cst_99 = arith.constant dense<0.000000e+00> : vector<2x64xf32>
      %204 = tpu.matmul %202, %203, %cst_99 {dimension_numbers = #tpu.dot_dimension_numbers<[1], [0], [0], [1], [0, 0, 1, 1], [], []>} : vector<2x128xbf16>, vector<128x64xbf16>, vector<2x64xf32> -> vector<2x64xf32>
      %c0_100 = arith.constant 0 : index
      %c0_101 = arith.constant 0 : index
      %205 = vector.load %arg21[%c0_100, %c0_101] : memref<1x64xf32, #tpu.memory_space<vmem>>, vector<1x64xf32>
      %206 = vector.broadcast %205 : vector<1x64xf32> to vector<2x64xf32>
      %207 = arith.addf %204, %206 : vector<2x64xf32>
      %cst_102 = arith.constant 0.000000e+00 : f32
      %208 = vector.broadcast %cst_102 : f32 to vector<2x64xf32>
      %209 = arith.maximumf %207, %208 : vector<2x64xf32>
      %210 = arith.truncf %209 : vector<2x64xf32> to vector<2x64xbf16>
      %c0_103 = arith.constant 0 : index
      %c0_104 = arith.constant 0 : index
      %211 = vector.load %arg22[%c0_103, %c0_104] : memref<64x5xbf16, #tpu.memory_space<vmem>>, vector<64x5xbf16>
      %cst_105 = arith.constant dense<0.000000e+00> : vector<2x5xf32>
      %212 = tpu.matmul %210, %211, %cst_105 {dimension_numbers = #tpu.dot_dimension_numbers<[1], [0], [0], [1], [0, 0, 1, 1], [], []>} : vector<2x64xbf16>, vector<64x5xbf16>, vector<2x5xf32> -> vector<2x5xf32>
      %c0_106 = arith.constant 0 : index
      %c0_107 = arith.constant 0 : index
      %213 = vector.load %arg23[%c0_106, %c0_107] : memref<1x5xf32, #tpu.memory_space<vmem>>, vector<1x5xf32>
      %214 = vector.broadcast %213 : vector<1x5xf32> to vector<2x5xf32>
      %215 = arith.addf %212, %214 : vector<2x5xf32>
      %c0_108 = arith.constant 0 : index
      %c0_109 = arith.constant 0 : index
      %216 = vector.load %arg24[%c0_108, %c0_109] : memref<2x5xf32, #tpu.memory_space<vmem>>, vector<2x5xf32>
      tpu.vector_store %arg24[%c0_108, %c0_109], %215 {strides = array<i32>} : memref<2x5xf32, #tpu.memory_space<vmem>>, vector<2x5xf32>,
    } else {
    }
    return
  }
  func.func @transform_0(%arg0: i32, %arg1: i32) -> (i32, i32, i32) {
    %c0_i32 = arith.constant 0 : i32
    %c0_i32_0 = arith.constant 0 : i32
    %c0_i32_1 = arith.constant 0 : i32
    return %arg0, %c0_i32, %c0_i32_0 : i32, i32, i32
  }
  func.func @transform_1(%arg0: i32, %arg1: i32) -> (i32, i32) {
    %c0_i32 = arith.constant 0 : i32
    %c0_i32_0 = arith.constant 0 : i32
    %c0_i32_1 = arith.constant 0 : i32
    return %c0_i32, %c0_i32_0 : i32, i32
  }
  func.func @transform_2(%arg0: i32, %arg1: i32) -> (i32, i32) {
    %c0_i32 = arith.constant 0 : i32
    %c0_i32_0 = arith.constant 0 : i32
    %c0_i32_1 = arith.constant 0 : i32
    return %c0_i32, %c0_i32_0 : i32, i32
  }
  func.func @transform_3(%arg0: i32, %arg1: i32) -> (i32, i32) {
    %c0_i32 = arith.constant 0 : i32
    %c0_i32_0 = arith.constant 0 : i32
    %c0_i32_1 = arith.constant 0 : i32
    return %c0_i32, %c0_i32_0 : i32, i32
  }
  func.func @transform_4(%arg0: i32, %arg1: i32) -> (i32, i32, i32) {
    %c0_i32 = arith.constant 0 : i32
    %c0_i32_0 = arith.constant 0 : i32
    %c0_i32_1 = arith.constant 0 : i32
    return %arg1, %c0_i32, %c0_i32_0 : i32, i32, i32
  }
  func.func @transform_5(%arg0: i32, %arg1: i32) -> (i32, i32, i32) {
    %c0_i32 = arith.constant 0 : i32
    %c0_i32_0 = arith.constant 0 : i32
    %c0_i32_1 = arith.constant 0 : i32
    return %arg1, %c0_i32, %c0_i32_0 : i32, i32, i32
  }
  func.func @transform_6(%arg0: i32, %arg1: i32) -> (i32, i32, i32) {
    %c0_i32 = arith.constant 0 : i32
    %c0_i32_0 = arith.constant 0 : i32
    %c0_i32_1 = arith.constant 0 : i32
    return %arg1, %c0_i32, %c0_i32_0 : i32, i32, i32
  }
  func.func @transform_7(%arg0: i32, %arg1: i32) -> (i32, i32, i32) {
    %c0_i32 = arith.constant 0 : i32
    %c0_i32_0 = arith.constant 0 : i32
    %c0_i32_1 = arith.constant 0 : i32
    return %arg1, %c0_i32, %c0_i32_0 : i32, i32, i32
  }
  func.func @transform_8(%arg0: i32, %arg1: i32) -> (i32, i32, i32) {
    %c0_i32 = arith.constant 0 : i32
    %c0_i32_0 = arith.constant 0 : i32
    %c0_i32_1 = arith.constant 0 : i32
    return %arg1, %c0_i32, %c0_i32_0 : i32, i32, i32
  }
  func.func @transform_9(%arg0: i32, %arg1: i32) -> (i32, i32, i32) {
    %c0_i32 = arith.constant 0 : i32
    %c0_i32_0 = arith.constant 0 : i32
    %c0_i32_1 = arith.constant 0 : i32
    return %arg1, %c0_i32, %c0_i32_0 : i32, i32, i32
  }
  func.func @transform_10(%arg0: i32, %arg1: i32) -> (i32, i32, i32) {
    %c0_i32 = arith.constant 0 : i32
    %c0_i32_0 = arith.constant 0 : i32
    %c0_i32_1 = arith.constant 0 : i32
    return %arg1, %c0_i32, %c0_i32_0 : i32, i32, i32
  }
  func.func @transform_11(%arg0: i32, %arg1: i32) -> (i32, i32, i32) {
    %c0_i32 = arith.constant 0 : i32
    %c0_i32_0 = arith.constant 0 : i32
    %c0_i32_1 = arith.constant 0 : i32
    return %arg1, %c0_i32, %c0_i32_0 : i32, i32, i32
  }
  func.func @transform_12(%arg0: i32, %arg1: i32) -> (i32, i32, i32) {
    %c0_i32 = arith.constant 0 : i32
    %c0_i32_0 = arith.constant 0 : i32
    %c0_i32_1 = arith.constant 0 : i32
    return %arg1, %c0_i32, %c0_i32_0 : i32, i32, i32
  }
  func.func @transform_13(%arg0: i32, %arg1: i32) -> (i32, i32, i32) {
    %c0_i32 = arith.constant 0 : i32
    %c0_i32_0 = arith.constant 0 : i32
    %c0_i32_1 = arith.constant 0 : i32
    return %arg1, %c0_i32, %c0_i32_0 : i32, i32, i32
  }
  func.func @transform_14(%arg0: i32, %arg1: i32) -> (i32, i32, i32) {
    %c0_i32 = arith.constant 0 : i32
    %c0_i32_0 = arith.constant 0 : i32
    %c0_i32_1 = arith.constant 0 : i32
    return %arg1, %c0_i32, %c0_i32_0 : i32, i32, i32
  }
  func.func @transform_15(%arg0: i32, %arg1: i32) -> (i32, i32, i32) {
    %c0_i32 = arith.constant 0 : i32
    %c0_i32_0 = arith.constant 0 : i32
    %c0_i32_1 = arith.constant 0 : i32
    return %arg1, %c0_i32, %c0_i32_0 : i32, i32, i32
  }
  func.func @transform_16(%arg0: i32, %arg1: i32) -> (i32, i32) {
    %c0_i32 = arith.constant 0 : i32
    %c0_i32_0 = arith.constant 0 : i32
    %c0_i32_1 = arith.constant 0 : i32
    return %c0_i32, %c0_i32_0 : i32, i32
  }
  func.func @transform_17(%arg0: i32, %arg1: i32) -> (i32, i32) {
    %c0_i32 = arith.constant 0 : i32
    %c0_i32_0 = arith.constant 0 : i32
    %c0_i32_1 = arith.constant 0 : i32
    return %c0_i32, %c0_i32_0 : i32, i32
  }
  func.func @transform_18(%arg0: i32, %arg1: i32) -> (i32, i32) {
    %c0_i32 = arith.constant 0 : i32
    %c0_i32_0 = arith.constant 0 : i32
    %c0_i32_1 = arith.constant 0 : i32
    return %c0_i32, %c0_i32_0 : i32, i32
  }
  func.func @transform_19(%arg0: i32, %arg1: i32) -> (i32, i32) {
    %c0_i32 = arith.constant 0 : i32
    %c0_i32_0 = arith.constant 0 : i32
    %c0_i32_1 = arith.constant 0 : i32
    return %c0_i32, %c0_i32_0 : i32, i32
  }
  func.func @transform_20(%arg0: i32, %arg1: i32) -> (i32, i32) {
    %c0_i32 = arith.constant 0 : i32
    %c0_i32_0 = arith.constant 0 : i32
    %c0_i32_1 = arith.constant 0 : i32
    return %c0_i32, %c0_i32_0 : i32, i32
  }
  func.func @transform_21(%arg0: i32, %arg1: i32) -> (i32, i32) {
    %c0_i32 = arith.constant 0 : i32
    %c0_i32_0 = arith.constant 0 : i32
    %c0_i32_1 = arith.constant 0 : i32
    return %c0_i32, %c0_i32_0 : i32, i32
  }
  func.func @transform_22(%arg0: i32, %arg1: i32) -> (i32, i32) {
    %c0_i32 = arith.constant 0 : i32
    %c0_i32_0 = arith.constant 0 : i32
    return %arg0, %c0_i32 : i32, i32
  }
}

</mosaic_0001>

<bundles_post_ra>
// kernel: tpu_custom_call.1
= control target key start
LH: loop header
LB: loop body
LE: loop exit
PB: predicated region body
PF: predicated region fallthrough
CT: control target
= control target key end

     0   :  { %s3512_s0 = inlined_call_operand.vmem [shape: f32[2,16,1], index: 0, kind: input, shape index: {}]   ;;  %s3513_s1 = inlined_call_operand.vmem [shape: f32[16,32], index: 1, kind: input, shape index: {}]   ;;  %s3514_s2 = inlined_call_operand.vmem [shape: f32[1,32], index: 2, kind: input, shape index: {}]   ;;  %s3515_s3 = inlined_call_operand.vmem [shape: f32[1,32], index: 3, kind: input, shape index: {}]   ;;  %s3516_s4 = inlined_call_operand.vmem [shape: bf16[2,32,96], index: 4, kind: input, shape index: {}]   ;;  %s3517_s5 = inlined_call_operand.vmem [shape: f32[2,1,96], index: 5, kind: input, shape index: {}]   ;;  %s3518_s6 = inlined_call_operand.vmem [shape: bf16[2,32,32], index: 6, kind: input, shape index: {}]   ;;  %s3519_s7 = inlined_call_operand.vmem [shape: f32[2,1,32], index: 7, kind: input, shape index: {}]   ;;  %s3520_s8 = inlined_call_operand.vmem [shape: f32[2,1,32], index: 8, kind: input, shape index: {}]   ;;  %s3521_s9 = inlined_call_operand.vmem [shape: f32[2,1,32], index: 9, kind: input, shape index: {}]   ;;  %s3522_s10 = inlined_call_operand.vmem [shape: bf16[2,32,64], index: 10, kind: input, shape index: {}]   ;;  %s3523_s11 = inlined_call_operand.vmem [shape: f32[2,1,64], index: 11, kind: input, shape index: {}]   ;;  %s3524_s12 = inlined_call_operand.vmem [shape: bf16[2,64,32], index: 12, kind: input, shape index: {}]   ;;  %s3525_s13 = inlined_call_operand.vmem [shape: f32[2,1,32], index: 13, kind: input, shape index: {}]   ;;  %s3526_s14 = inlined_call_operand.vmem [shape: f32[2,1,32], index: 14, kind: input, shape index: {}]   ;;  %s3527_s15 = inlined_call_operand.vmem [shape: f32[2,1,32], index: 15, kind: input, shape index: {}]   ;;  %s3528_s16 = inlined_call_operand.vmem [shape: bf16[32,128], index: 16, kind: input, shape index: {}]   ;;  %s3529_s17 = inlined_call_operand.vmem [shape: f32[1,128], index: 17, kind: input, shape index: {}]   ;;  %s3530_s18 = inlined_call_operand.vmem [shape: bf16[128,64], index: 18, kind: input, shape index: {}]   ;;  %s3531_s19 = inlined_call_operand.vmem [shape: f32[1,64], index: 19, kind: input, shape index: {}]   ;;  %s3532_s20 = inlined_call_operand.vmem [shape: bf16[64,5], index: 20, kind: input, shape index: {}]   ;;  %s3533_s21 = inlined_call_operand.vmem [shape: f32[1,5], index: 21, kind: input, shape index: {}]   ;;  %s3534_s22 = inlined_call_operand.hbm [shape: f32[2,5], index: 22, kind: output, shape index: {}]  }
   0x1   :  { %3541 = sst [smem:[#allocation10_spill]] %s3512_s0 }
   0x2   :  { %3542 = sst [smem:[#allocation11_spill]] %s3513_s1 }
   0x3   :  { %3543 = sst [smem:[#allocation12_spill]] %s3514_s2 }
   0x4   :  { %3544 = sst [smem:[#allocation13_spill]] %s3515_s3 }
   0x5   :  { %3545 = sst [smem:[#allocation14_spill]] %s3516_s4 }
   0x6   :  { %3546 = sst [smem:[#allocation15_spill]] %s3517_s5 }
   0x7   :  { %3547 = sst [smem:[#allocation16_spill]] %s3518_s6 }
   0x8   :  { %3548 = sst [smem:[#allocation17_spill]] %s3529_s17 }
   0x9   :  { %3549 = sst [smem:[#allocation18_spill]] %s3530_s18 }
   0xa   :  { %3550 = sst [smem:[#allocation19_spill]] %s3531_s19 }
   0xb   :  { %3551 = sst [smem:[#allocation20_spill]] %s3532_s20 }
   0xc   :  { %3552 = sst [smem:[#allocation21_spill]] %s3533_s21 }
   0xd   :  { %3553 = sst [smem:[#allocation22_spill]] %s3534_s22 }
   0xe   :  { %27 = vsyncpa [#allocation5], 0  ;;  %s2968_s3 = smov 0   ;;  %s2970_s28 = smov 0  }
   0xf   :  { %s2972_s29 = smov 0  }
  0x10 LB: > { %3554 = sst [smem:[#allocation7_spill]] %s2829_s28  ;;  %s42_s4 = sadd.s32 1, %s2829_s28  ;;  %s2833_s29 = sphi %s2972_s29, %s33_s29   ;;  %s2829_s28 = sphi %s2970_s28, %s3581_s28   ;;  %s2825_s3 = sphi %s2968_s3, %s3580_s3  }
  0x11   : > { %3555 = sst [smem:[#allocation8_spill]] %s2833_s29  ;;  %p43_p0 = scmp.ge.s32.totalorder %s42_s4, 2 }
  0x12   : > { %p2467_p1 = scmp.ge.s32.totalorder %s2833_s29, 1  ;;  %p731_p2 = scmp.lt.s32.totalorder %s2833_s29, 3 }
  0x13   : > { %s3583_s4 = smov (%p43_p0, %s42_s4), 0 }
  0x14   : > { %3556 = sst [smem:[#allocation9_spill]] %s3583_s4  ;;  %p732_p3 = pnand %p2467_p1, %p731_p2 }
  0x15   : > { %p840_p4 = scmp.lt.s32.totalorder (!%p732_p3), %s2825_s3, 1  ;;  %s3558_s2 = sld [smem:[#allocation14_spill]] (!%p732_p3) }
  0x16   : > { %735 = sbr.rel (%p732_p3) target bundleno = 2662 (0xa66), region = 108  ;;  %s3559_s28 = sld [smem:[#allocation16_spill]] (!%p732_p3) }
  0x17   : > { %p2476_p5 = scmp.ne.s32.totalorder (!%p732_p3), %s2825_s3, 0 }
  0x1b   : > { %s2991_s0 = scalar_select %p840_p4, %s2825_s3, 1 }
  0x1c   : > { %s3560_s21 = sld [smem:[#allocation10_spill]] (!%p2476_p5) }
  0x1d   : > { %s2604_s23 = sshll.u32 %s2991_s0, 4  ;;  %s869_s4 = scalar_lea.vmem %s3523_s11, %s2991_s0 }
  0x1e   : > { %s3001_s27 = scalar_lea.vmem %s3558_s2, %s2604_s23  ;;  %s3006_s22 = scalar_lea.vmem %s3559_s28, %s2604_s23 }
  0x1f   : > { %s3023_s2 = scalar_lea.vmem %s3522_s10, %s2604_s23  ;;  %s2607_s6 = sshll.u32 %s2991_s0, 5 }
  0x20   : > { %s3033_s19 = scalar_lea.vmem %s3524_s12, %s2607_s6  ;;  %s877_s1 = scalar_lea.vmem %s3525_s13, %s2991_s0 }
  0x21   : > { %s880_s25 = scalar_lea.vmem %s3526_s14, %s2991_s0  ;;  %888 = sbr.rel (%p2476_p5) target bundleno = 171 (0xab), region = 112 }
  0x22   : > { %s3561_s30 = sld [smem:[#allocation12_spill]] (!%p2476_p5) }
  0x23   : > { %s3562_s29 = sld [smem:[#allocation13_spill]] (!%p2476_p5) }
  0x24   : > { %s3563_s18 = sld [smem:[#allocation11_spill]] (!%p2476_p5) }
  0x26   : > { %v891_v0 = vld [vmem:[%s3560_s21 + $0x10] sm:$0xff]  ;;  %v889_v1 = vld [vmem:[%s3560_s21] sm:$0xff]  ;;  %v2835_v2 = vmov 0   ;;  %v892_v3 = vld [vmem:[%s3560_s21 + $0x18] sm:$0xff]  ;;  %vm935_vm0 = vcmask 261120  }
  0x27   : > { %2681 = vset.pattern.permute.xlu1 %v2835_v2  ;;  %2680 = vset.pattern.permute.xlu0 %v2835_v2  ;;  %v890_v4 = vld [vmem:[%s3560_s21 + $0x8] sm:$0xff] }
  0x28   : > { %906 = vperm.xlu1 %2681, %v891_v0   ;;  %896 = vperm.xlu0 %2680, %v889_v1   ;;  %v2682_v5 = vld [vmem:[%s3561_s30] ss:$0 sm:$0xff] }
  0x29   : > { %v2683_v6 = vld [vmem:[%s3562_s29] ss:$0 sm:$0xff] }
  0x2a   : > { %v929_v11 = vld [vmem:[%s3563_s18] sm:$0xff]  ;;  %v930_v20 = vld [vmem:[%s3563_s18 + $0x8] sm:$0xff] }
  0x30   : > { %911 = vperm.xlu1 %2681, %v892_v3   ;;  %901 = vperm.xlu0 %2680, %v890_v4  }
  0x9a   : > { %v907_v7 = vpop.permute.xlu1 %906  ;;  %v897_v8 = vpop.permute.xlu0 %896 }
  0x9b   : > { %v919_v9 = vmul.f32 %v2682_v5, %v907_v7  ;;  %v917_v10 = vmul.f32 %v2682_v5, %v897_v8 }
  0x9d   : > { %v927_v12 = vadd.f32 %v2683_v6, %v919_v9  ;;  %v925_v13 = vadd.f32 %v2683_v6, %v917_v10 }
  0x9f   : > { %v933_v14 = vadd.f32 %v929_v11, %v927_v12  ;;  %v931_v15 = vadd.f32 %v929_v11, %v925_v13 }
  0xa1   : > { %938 = vst.msk [vmem:[#allocation2 + $0x10] sm:$0xff] %vm935_vm0, %v933_v14 }
  0xa2   : > { %936 = vst.msk [vmem:[#allocation2] sm:$0xff] %vm935_vm0, %v931_v15  ;;  %v912_v16 = vpop.permute.xlu1 %911  ;;  %v902_v17 = vpop.permute.xlu0 %901 }
  0xa3   : > { %v920_v18 = vmul.f32 %v2682_v5, %v912_v16  ;;  %v918_v19 = vmul.f32 %v2682_v5, %v902_v17 }
  0xa5   : > { %v928_v21 = vadd.f32 %v2683_v6, %v920_v18  ;;  %v926_v22 = vadd.f32 %v2683_v6, %v918_v19 }
  0xa7   : > { %v934_v23 = vadd.f32 %v930_v20, %v928_v21  ;;  %v932_v24 = vadd.f32 %v930_v20, %v926_v22 }
  0xa9   : > { %939 = vst.msk [vmem:[#allocation2 + $0x18] sm:$0xff] %vm935_vm0, %v934_v23 }
  0xaa   : > { %937 = vst.msk [vmem:[#allocation2 + $0x8] sm:$0xff] %vm935_vm0, %v932_v24 }
  0xab PF: > { %v2609_v25 = vld [vmem:[%s3001_s27 + $0x8] sm:$0xff]  ;;  %v2608_v26 = vld [vmem:[%s3001_s27] sm:$0xff]  ;;  %vm966_vm1 = vcmask 261120   ;;  %v3081_v30 = vld [vmem:[#allocation2 + $0x10] sm:$0xff]  ;;  %s3564_s26 = sld [smem:[#allocation15_spill]]  ;;  %s2836_s28 = smov 88  }
  0xac   : > { %v3074_v27 = vld [vmem:[#allocation2] sm:$0xff]  ;;  %979 = vmatpush.bf16.msra.mxu0 %v2609_v25  ;;  %s2837_s6 = smov 120   ;;  %s2838_s29 = smov 96   ;;  %vm1003_vm2 = vcmask 64512   ;;  %vm1055_vm3 = vcmask 130048   ;;  %vm1324_vm4 = vcmask 130112  }
  0xad   : > { %s2839_s24 = smov 112   ;;  %s2840_s17 = smov 80   ;;  %vm1495_vm5 = vcmask 195712   ;;  %vm1666_vm6 = vcmask 261312  }
  0xae   : > { %s2841_s20 = smov 104   ;;  %s2842_s5 = smov 72  }
  0xaf   : > { %s2843_s27 = smov 56   ;;  %s2844_s23 = smov 64  }
  0xb0   : > { %980 = vmatpush.bf16.msra.mxu0 %v2608_v26  ;;  %v3083_v31 = vld [vmem:[#allocation2 + $0x18] sm:$0xff]  ;;  %p2541_p6 = scmp.ne.s32.totalorder %s2825_s3, 1 }
  0xb1   : > { %v3076_v28 = vld [vmem:[#allocation2 + $0x8] sm:$0xff]  ;;  %v945_v32 = vpack.c.bf16 %v3083_v31, %v3081_v30  ;;  %s3565_s30 = scalar_lea.vmem %s3564_s26, %s2991_s0  ;;  %s2845_s26 = smov 48  }
  0xb2   : > { %v944_v29 = vpack.c.bf16 %v3076_v28, %v3074_v27  ;;  %v2684_v34 = vld [vmem:[%s3565_s30] ss:$0 sm:$0xff]  ;;  %s2846_s30 = smov 40   ;;  %s3571_s3 = sld [smem:[#allocation20_spill]] (!%p2541_p6) }
  0xb4   : > { %2485 = vmatmul.msk.bf16.vlgmr.msra.gmra.mxu0 %vm966_vm1, %v944_v29 }
  0xc4   : > { %2486 = vmatmul.msk.bf16.gmra.mxu0 %vm966_vm1, %v945_v32 }
 0x131   : > { %v982_v33 = vpop.f32.mrf.mxu0 }
 0x132   : > { %v983_v35 = vadd.f32 %v2684_v34, %v982_v33 }
 0x134   : > { %v992_v37 = vpack.c.bf16 %v983_v35, %v983_v35 }
 0x136   : > { %v998_v40 = vunpack.c.l.b16 %v992_v37 }
 0x139   : > { %v984_v36 = vpop.f32.mrf.mxu0 }
 0x13a   : > { %v985_v38 = vadd.f32 %v2684_v34, %v984_v36 }
 0x13c   : > { %v993_v39 = vpack.c.bf16 %v985_v38, %v985_v38 }
 0x13e   : > { %v999_v41 = vunpack.c.l.b16 %v993_v39 }
 0x140   : > { %v3093_v42 = vpack.c.b16 %v999_v41, %v998_v40 }
 0x141   : > { %v987_v43 = vpop.f32.mrf.mxu0 }
 0x142   : > { %1160 = vrot.lane.b32.xlu1 %v3093_v42, %s2836_s28  ;;  %v988_v44 = vadd.f32 %v2684_v34, %v987_v43 }
 0x144   : > { %v994_v46 = vpack.c.bf16 %v988_v44, %v988_v44 }
 0x146   : > { %v1026_v49 = vunpack.c.l.b16 %v994_v46 }
 0x149   : > { %v989_v45 = vpop.f32.mrf.mxu0 }
 0x14a   : > { %v990_v47 = vadd.f32 %v2684_v34, %v989_v45  ;;  %1158 = vrot.lane.b32.xlu1 %v3093_v42, %s2837_s6 }
 0x14c   : > { %v995_v48 = vpack.c.bf16 %v990_v47, %v990_v47 }
 0x14e   : > { %v1027_v50 = vunpack.c.l.b16 %v995_v48 }
 0x150   : > { %v3097_v51 = vpack.c.b16 %v1027_v50, %v1026_v49 }
 0x152   : > { %1184 = vrot.lane.b32.xlu2 %v3097_v51, %s2836_s28  ;;  %1029 = vrot.lane.b32.xlu0 %v3097_v51, %s2838_s29  ;;  %s2847_s28 = smov 8  }
 0x153   : > { %1329 = vrot.lane.b32.xlu1 %v3093_v42, %s2839_s24 }
 0x15a   : > { %1331 = vrot.lane.b32.xlu2 %v3093_v42, %s2840_s17  ;;  %1001 = vrot.lane.b32.xlu0 %v3093_v42, %s2838_s29  ;;  %s2849_s29 = smov 24  }
 0x15b   : > { %1353 = vrot.lane.b32.xlu1 %v3097_v51, %s2839_s24  ;;  %s3569_s24 = scalar_lea.vmem %s3527_s15, %s2991_s0 }
 0x162   : > { %1355 = vrot.lane.b32.xlu2 %v3097_v51, %s2840_s17  ;;  %1182 = vrot.lane.b32.xlu0 %v3097_v51, %s2837_s6  ;;  %s2848_s6 = smov 16   ;;  %s3566_s17 = scalar_lea.vmem %s3519_s7, %s2991_s0 }
 0x163   : > { %1524 = vrot.lane.b32.xlu1 %v3097_v51, %s2841_s20 }
 0x16a   : > { %1500 = vrot.lane.b32.xlu2 %v3093_v42, %s2841_s20  ;;  %1502 = vrot.lane.b32.xlu0 %v3093_v42, %s2842_s5  ;;  %s3570_s20 = sld [smem:[#allocation18_spill]] (!%p2541_p6) }
 0x172   : > { %1263 = vrot.lane.b32.xlu2 %v3093_v42, %s2843_s27  ;;  %1526 = vrot.lane.b32.xlu0 %v3097_v51, %s2842_s5  ;;  %s3567_s5 = scalar_lea.vmem %s3520_s8, %s2991_s0 }
 0x17a   : > { %1109 = vrot.lane.b32.xlu2 %v3093_v42, %s2844_s23 }
 0x182   : > { %1134 = vrot.lane.b32.xlu2 %v3097_v51, %s2844_s23 }
 0x1ac   : > { %v1185_v52 = vpop.permute.xlu2 %1184 }
 0x1ad   : > { %v1190_v58 = vsel %vm1003_vm2, %v1185_v52, 0 }
 0x1b4   : > { %v1332_v53 = vpop.permute.xlu2 %1331  ;;  %v1161_v59 = vpop.permute.xlu1 %1160 }
 0x1b5   : > { %v1166_v0 = vsel %vm1003_vm2, %v1161_v59, 0  ;;  %v1337_v3 = vsel %vm1003_vm2, %v1332_v53, 0 }
 0x1bc   : > { %v1356_v54 = vpop.permute.xlu2 %1355  ;;  %v1159_v4 = vpop.permute.xlu1 %1158 }
 0x1bd   : > { %v1361_v62 = vsel %vm1003_vm2, %v1356_v54, 0 }
 0x1c4   : > { %v1030_v55 = vpop.permute.xlu0 %1029  ;;  %v1501_v56 = vpop.permute.xlu2 %1500 }
 0x1c5   : > { %v1035_v57 = vsel %vm1003_vm2, %v1030_v55, 0  ;;  %v1330_v7 = vpop.permute.xlu1 %1329 }
 0x1c6   : > { %1044 = vmatpush.bf16.xpose.msra.mxu2 %v1035_v57 }
 0x1cc   : > { %v1264_v60 = vpop.permute.xlu2 %1263  ;;  %v1002_v61 = vpop.permute.xlu0 %1001 }
 0x1cd   : > { %2488 = vmatmul.msk.bf16.vlgmr.msra.gmra.mxu2 %vm1003_vm2, %v3097_v51  ;;  %v1008_v63 = vsel %vm1003_vm2, %v1002_v61, 0  ;;  %v1354_v11 = vpop.permute.xlu1 %1353 }
 0x1ce   : > { %1199 = vmatpush.bf16.xpose.msrb.mxu2 %v1190_v58  ;;  %1017 = vmatpush.bf16.xpose.msra.mxu1 %v1008_v63 }
 0x1d4   : > { %v1110_v1 = vpop.permute.xlu2 %1109  ;;  %v1183_v2 = vpop.permute.xlu0 %1182 }
 0x1d5   : > { %2487 = vmatmul.msk.bf16.vlgmr.msra.gmra.mxu1 %vm1003_vm2, %v3093_v42  ;;  %1122 = vmatpush.bf16.msrb.mxu0 %v1110_v1  ;;  %v1525_v12 = vpop.permute.xlu1 %1524 }
 0x1d6   : > { %1370 = vmatpush.bf16.xpose.msra.mxu2 %v1361_v62  ;;  %1175 = vmatpush.bf16.xpose.msrb.mxu1 %v1166_v0 }
 0x1dc   : > { %v1135_v5 = vpop.permute.xlu2 %1134  ;;  %v1503_v6 = vpop.permute.xlu0 %1502 }
 0x1dd   : > { %1147 = vmatpush.bf16.msra.mxu3 %v1135_v5  ;;  %2492 = vmatmul.msk.bf16.vlgmr.msrb.gmra.mxu2 %vm1003_vm2, %v1183_v2  ;;  %v1508_v9 = vsel %vm1003_vm2, %v1503_v6, 0 }
 0x1de   : > { %1346 = vmatpush.bf16.xpose.msra.mxu1 %v1337_v3 }
 0x1e1   : > { %1276 = vmatpush.bf16.msrb.mxu3 %v1264_v60 }
 0x1e4   : > { %v1527_v8 = vpop.permute.xlu0 %1526 }
 0x1e5   : > { %v1532_v10 = vsel %vm1003_vm2, %v1527_v8, 0  ;;  %2491 = vmatmul.msk.bf16.vlgmr.msrb.gmra.mxu1 %vm1003_vm2, %v1159_v4 }
 0x1e6   : > { %1517 = vmatpush.bf16.xpose.msrb.mxu1 %v1508_v9  ;;  %1541 = vmatpush.bf16.xpose.msrb.mxu2 %v1532_v10 }
 0x1ed   : > { %2496 = vmatmul.msk.bf16.vlgmr.msra.gmra.mxu2 %vm1003_vm2, %v1354_v11 }
 0x1f5   : > { %2495 = vmatmul.msk.bf16.vlgmr.msra.gmra.mxu1 %vm1003_vm2, %v1330_v7 }
 0x1fd   : > { %2500 = vmatmul.msk.bf16.vlgmr.msrb.gmra.mxu2 %vm1003_vm2, %v1525_v12 }
 0x205   : > { %2499 = vmatmul.msk.bf16.vlgmr.msrb.gmra.mxu1 %vm1003_vm2, %v1501_v56 }
 0x250   : > { %v1046_v13 = vpop.f32.mrf.mxu2 }
 0x251   : > { %v3137_v18 = vmul.f32 0.35355338, %v1046_v13 }
 0x252   : > { %v1019_v14 = vpop.f32.mrf.mxu1 }
 0x253   : > { %v3133_v15 = vmul.f32 0.35355338, %v1019_v14  ;;  %v1062_v21 = vsel %vm1055_vm3, %v3137_v18, -inf }
 0x255   : > { %v1056_v16 = vsel %vm1055_vm3, %v3133_v15, -inf }
 0x256   : > { %1057 = vmax.xlane.f32.xlu2 %v1056_v16 }
 0x258   : > { %v1048_v17 = vpop.f32.mrf.mxu2 }
 0x259   : > { %v3145_v24 = vmul.f32 0.35355338, %v1048_v17 }
 0x25a   : > { %v1021_v19 = vpop.f32.mrf.mxu1 }
 0x25b   : > { %v3139_v20 = vmul.f32 0.35355338, %v1021_v19  ;;  %v1065_v32 = vsel %vm1055_vm3, %v3145_v24, -inf }
 0x25d   : > { %v1059_v22 = vsel %vm1055_vm3, %v3139_v20, -inf }
 0x25e   : > { %1063 = vmax.xlane.f32.xlu2 %v1062_v21  ;;  %1060 = vmax.xlane.f32.xlu0 %v1059_v22 }
 0x260   : > { %v1201_v23 = vpop.f32.mrf.mxu2 }
 0x261   : > { %v3153_v34 = vmul.f32 0.35355338, %v1201_v23 }
 0x262   : > { %v1177_v25 = vpop.f32.mrf.mxu1 }
 0x263   : > { %v3147_v26 = vmul.f32 0.35355338, %v1177_v25  ;;  %v1216_v38 = vsel %vm1055_vm3, %v3153_v34, -inf }
 0x265   : > { %v1210_v29 = vsel %vm1055_vm3, %v3147_v26, -inf }
 0x266   : > { %1211 = vmax.xlane.f32.xlu1 %v1210_v29  ;;  %1066 = vmax.xlane.f32.xlu0 %v1065_v32 }
 0x268   : > { %v1203_v33 = vpop.f32.mrf.mxu2 }
 0x269   : > { %v3169_v47 = vmul.f32 0.35355338, %v1203_v33 }
 0x26a   : > { %v1179_v35 = vpop.f32.mrf.mxu1 }
 0x26b   : > { %v3155_v36 = vmul.f32 0.35355338, %v1179_v35  ;;  %v1219_v52 = vsel %vm1055_vm3, %v3169_v47, -inf }
 0x26d   : > { %v1213_v37 = vsel %vm1055_vm3, %v3155_v36, -inf }
 0x26e   : > { %1214 = vmax.xlane.f32.xlu2 %v1213_v37  ;;  %1217 = vmax.xlane.f32.xlu0 %v1216_v38 }
 0x270   : > { %v1372_v39 = vpop.f32.mrf.mxu2 }
 0x271   : > { %v3161_v40 = vmul.f32 0.35355338, %v1372_v39 }
 0x272   : > { %v1348_v41 = vpop.f32.mrf.mxu1 }
 0x273   : > { %v3163_v43 = vmul.f32 0.35355338, %v1348_v41  ;;  %v1387_v45 = vsel %vm1055_vm3, %v3161_v40, -inf }
 0x275   : > { %v1381_v44 = vsel %vm1055_vm3, %v3163_v43, -inf }
 0x276   : > { %1382 = vmax.xlane.f32.xlu1 %v1381_v44  ;;  %1388 = vmax.xlane.f32.xlu0 %v1387_v45 }
 0x278   : > { %v1374_v46 = vpop.f32.mrf.mxu2 }
 0x279   : > { %v3177_v54 = vmul.f32 0.35355338, %v1374_v46 }
 0x27a   : > { %v1350_v48 = vpop.f32.mrf.mxu1 }
 0x27b   : > { %v3171_v49 = vmul.f32 0.35355338, %v1350_v48  ;;  %v1390_v56 = vsel %vm1055_vm3, %v3177_v54, -inf }
 0x27d   : > { %v1384_v50 = vsel %vm1055_vm3, %v3171_v49, -inf }
 0x27e   : > { %1385 = vmax.xlane.f32.xlu2 %v1384_v50  ;;  %1220 = vmax.xlane.f32.xlu1 %v1219_v52 }
 0x280   : > { %v1543_v53 = vpop.f32.mrf.mxu2 }
 0x281   : > { %v3189_v63 = vmul.f32 0.35355338, %v1543_v53 }
 0x282   : > { %v1519_v55 = vpop.f32.mrf.mxu1 }
 0x283   : > { %v1558_v0 = vsel %vm1055_vm3, %v3189_v63, -inf  ;;  %v3195_v1 = vmul.f32 0.35355338, %v1519_v55 }
 0x285   : > { %v1552_v2 = vsel %vm1055_vm3, %v3195_v1, -inf }
 0x286   : > { %1391 = vmax.xlane.f32.xlu1 %v1390_v56 }
 0x288   : > { %v1545_v57 = vpop.f32.mrf.mxu2 }
 0x289   : > { %v3181_v58 = vmul.f32 0.35355338, %v1545_v57 }
 0x28a   : > { %v1521_v59 = vpop.f32.mrf.mxu1 }
 0x28b   : > { %v3183_v60 = vmul.f32 0.35355338, %v1521_v59  ;;  %v1561_v62 = vsel %vm1055_vm3, %v3181_v58, -inf }
 0x28d   : > { %v1555_v61 = vsel %vm1055_vm3, %v3183_v60, -inf }
 0x28e   : > { %1556 = vmax.xlane.f32.xlu0 %v1555_v61  ;;  %1562 = vmax.xlane.f32.xlu1 %v1561_v62 }
 0x296   : > { %1434 = vrot.lane.b32.xlu2 %v3093_v42, %s2845_s26  ;;  %1559 = vmax.xlane.f32.xlu0 %v1558_v0 }
 0x2bf   : > { %1553 = vmax.xlane.f32.xlu2 %v1552_v2 }
 0x2c9   : > { %v1058_v3 = vpop.xlane.xlu2 %1057 }
 0x2ca   : > { %v1068_v4 = vsub.f32 %v3133_v15, %v1058_v3 }
 0x2cc   : > { %v1072_v5 = vmul.f32 1.442695, %v1068_v4 }
 0x2ce   : > { %2692 = vpow2.f32 %v1072_v5 }
 0x2d1   : > { %v1061_v6 = vpop.xlane.xlu0 %1060  ;;  %v1064_v7 = vpop.xlane.xlu2 %1063 }
 0x2d2   : > { %v1069_v8 = vsub.f32 %v3139_v20, %v1061_v6  ;;  %v1070_v11 = vsub.f32 %v3137_v18, %v1064_v7 }
 0x2d4   : > { %v3201_v9 = vpop.eup %2692  ;;  %v1074_v10 = vmul.f32 1.442695, %v1069_v8  ;;  %v1076_v13 = vmul.f32 1.442695, %v1070_v11 }
 0x2d5   : > { %v1080_v12 = vsel %vm1055_vm3, %v3201_v9, 0.0 }
 0x2d6   : > { %1081 = vadd.xlane.f32.xlu0 %v1080_v12  ;;  %2694 = vpow2.f32 %v1074_v10 }
 0x2d7   : > { %2696 = vpow2.f32 %v1076_v13 }
 0x2d9   : > { %v1212_v14 = vpop.xlane.xlu1 %1211  ;;  %v1067_v16 = vpop.xlane.xlu0 %1066 }
 0x2da   : > { %v1222_v15 = vsub.f32 %v3147_v26, %v1212_v14  ;;  %v1071_v17 = vsub.f32 %v3145_v24, %v1067_v16 }
 0x2dc   : > { %v1226_v19 = vmul.f32 1.442695, %v1222_v15  ;;  %v1078_v21 = vmul.f32 1.442695, %v1071_v17  ;;  %v3208_v20 = vpop.eup %2694 }
 0x2dd   : > { %v1083_v18 = vsel %vm1055_vm3, %v3208_v20, 0.0  ;;  %v3213_v25 = vpop.eup %2696 }
 0x2de   : > { %2698 = vpow2.f32 %v1226_v19  ;;  %1084 = vadd.xlane.f32.xlu1 %v1083_v18  ;;  %v1086_v33 = vsel %vm1055_vm3, %v3213_v25, 0.0 }
 0x2df   : > { %2700 = vpow2.f32 %v1078_v21 }
 0x2e1   : > { %v1215_v22 = vpop.xlane.xlu2 %1214 }
 0x2e2   : > { %v1223_v23 = vsub.f32 %v3155_v36, %v1215_v22  ;;  %v1218_v36 = vpop.xlane.xlu0 %1217 }
 0x2e3   : > { %v1224_v41 = vsub.f32 %v3153_v34, %v1218_v36 }
 0x2e4   : > { %v3215_v29 = vpop.eup %2698  ;;  %v1228_v26 = vmul.f32 1.442695, %v1223_v23 }
 0x2e5   : > { %v3217_v24 = vpop.eup %2700  ;;  %v1234_v32 = vsel %vm1055_vm3, %v3215_v29, 0.0  ;;  %v1230_v46 = vmul.f32 1.442695, %v1224_v41 }
 0x2e6   : > { %2702 = vpow2.f32 %v1228_v26  ;;  %1235 = vadd.xlane.f32.xlu0 %v1234_v32  ;;  %v1089_v35 = vsel %vm1055_vm3, %v3217_v24, 0.0  ;;  %1087 = vadd.xlane.f32.xlu1 %v1086_v33 }
 0x2e7   : > { %1090 = vadd.xlane.f32.xlu2 %v1089_v35 }
 0x2e9   : > { %v1383_v37 = vpop.xlane.xlu1 %1382 }
 0x2ea   : > { %v1393_v38 = vsub.f32 %v3163_v43, %v1383_v37  ;;  %v1389_v57 = vpop.xlane.xlu0 %1388 }
 0x2eb   : > { %v1395_v23 = vsub.f32 %v3161_v40, %v1389_v57 }
 0x2ec   : > { %v3226_v39 = vpop.eup %2702  ;;  %v1397_v44 = vmul.f32 1.442695, %v1393_v38 }
 0x2ed   : > { %v1237_v45 = vsel %vm1055_vm3, %v3226_v39, 0.0 }
 0x2ee   : > { %2704 = vpow2.f32 %v1397_v44  ;;  %1238 = vadd.xlane.f32.xlu1 %v1237_v45 }
 0x2ef   : > { %2706 = vpow2.f32 %v1230_v46 }
 0x2f1   : > { %v1386_v48 = vpop.xlane.xlu2 %1385  ;;  %v1221_v50 = vpop.xlane.xlu1 %1220 }
 0x2f2   : > { %v1394_v52 = vsub.f32 %v3171_v49, %v1386_v48  ;;  %v1225_v43 = vsub.f32 %v3169_v47, %v1221_v50 }
 0x2f4   : > { %v3232_v53 = vpop.eup %2704  ;;  %v1399_v55 = vmul.f32 1.442695, %v1394_v52  ;;  %v1232_v56 = vmul.f32 1.442695, %v1225_v43 }
 0x2f5   : > { %v1405_v34 = vsel %vm1055_vm3, %v3232_v53, 0.0  ;;  %v3237_v59 = vpop.eup %2706 }
 0x2f6   : > { %2708 = vpow2.f32 %v1399_v55  ;;  %1406 = vadd.xlane.f32.xlu0 %v1405_v34  ;;  %v1240_v62 = vsel %vm1055_vm3, %v3237_v59, 0.0 }
 0x2f7   : > { %2710 = vpow2.f32 %v1232_v56 }
 0x2f9   : > { %v1392_v2 = vpop.xlane.xlu1 %1391  ;;  %v1435_v17 = vpop.permute.xlu2 %1434 }
 0x2fa   : > { %v1396_v5 = vsub.f32 %v3177_v54, %v1392_v2 }
 0x2fc   : > { %v3239_v61 = vpop.eup %2708  ;;  %v1403_v7 = vmul.f32 1.442695, %v1396_v5 }
 0x2fd   : > { %v1408_v49 = vsel %vm1055_vm3, %v3239_v61, 0.0  ;;  %v3247_v0 = vpop.eup %2710 }
 0x2fe   : > { %1409 = vadd.xlane.f32.xlu1 %v1408_v49  ;;  %1241 = vadd.xlane.f32.xlu0 %v1240_v62  ;;  %v1243_v6 = vsel %vm1055_vm3, %v3247_v0, 0.0 }
 0x2ff   : > { %1288 = vrot.lane.b32.xlu2 %v3097_v51, %s2843_s27 }
 0x301   : > { %v1557_v47 = vpop.xlane.xlu0 %1556  ;;  %v1563_v14 = vpop.xlane.xlu1 %1562 }
 0x302   : > { %v1565_v3 = vsub.f32 %v3183_v60, %v1557_v47  ;;  %v1567_v16 = vsub.f32 %v3181_v58, %v1563_v14  ;;  %v1401_v58 = vmul.f32 1.442695, %v1395_v23 }
 0x304   : > { %v1570_v4 = vmul.f32 1.442695, %v1565_v3  ;;  %v1574_v15 = vmul.f32 1.442695, %v1567_v16 }
 0x306   : > { %1244 = vadd.xlane.f32.xlu1 %v1243_v6  ;;  %2712 = vpow2.f32 %v1570_v4 }
 0x307   : > { %1605 = vrot.lane.b32.xlu2 %v3093_v42, %s2846_s30  ;;  %2714 = vpow2.f32 %v1403_v7 }
 0x309   : > { %v1560_v8 = vpop.xlane.xlu0 %1559 }
 0x30a   : > { %v1566_v11 = vsub.f32 %v3189_v63, %v1560_v8 }
 0x30c   : > { %v3254_v10 = vpop.eup %2712  ;;  %v1572_v54 = vmul.f32 1.442695, %v1566_v11 }
 0x30d   : > { %v1579_v60 = vsel %vm1055_vm3, %v3254_v10, 0.0  ;;  %v3259_v12 = vpop.eup %2714 }
 0x30e   : > { %1580 = vadd.xlane.f32.xlu1 %v1579_v60  ;;  %2716 = vpow2.f32 %v1572_v54  ;;  %v1414_v13 = vsel %vm1055_vm3, %v3259_v12, 0.0 }
 0x30f   : > { %2718 = vpow2.f32 %v1574_v15 }
 0x314   : > { %v3263_v42 = vpop.eup %2716 }
 0x315   : > { %v1582_v63 = vsel %vm1055_vm3, %v3263_v42, 0.0  ;;  %v3268_v19 = vpop.eup %2718 }
 0x316   : > { %1415 = vadd.xlane.f32.xlu1 %v1414_v13  ;;  %v1585_v21 = vsel %vm1055_vm3, %v3268_v19, 0.0 }
 0x31e   : > { %1583 = vadd.xlane.f32.xlu1 %v1582_v63 }
 0x330   : > { %1586 = vadd.xlane.f32.xlu2 %v1585_v21 }
 0x332   : > { %v1554_v18 = vpop.xlane.xlu2 %1553 }
 0x333   : > { %v1564_v22 = vsub.f32 %v3195_v1, %v1554_v18 }
 0x335   : > { %v1568_v26 = vmul.f32 1.442695, %v1564_v22 }
 0x337   : > { %2720 = vpow2.f32 %v1568_v26  ;;  %1630 = vrot.lane.b32.xlu1 %v3097_v51, %s2846_s30 }
 0x338   : > { %2722 = vpow2.f32 %v1401_v58 }
 0x33d   : > { %v3275_v32 = vpop.eup %2720 }
 0x33e   : > { %v1576_v33 = vsel %vm1055_vm3, %v3275_v32, 0.0  ;;  %v3279_v35 = vpop.eup %2722 }
 0x33f   : > { %1577 = vadd.xlane.f32.xlu0 %v1576_v33  ;;  %v1411_v36 = vsel %vm1055_vm3, %v3279_v35, 0.0 }
 0x347   : > { %1412 = vadd.xlane.f32.xlu0 %v1411_v36 }
 0x349   : > { %v1082_v1 = vpop.xlane.xlu0 %1081 }
 0x34a   : > { %2724 = vrcp.f32 %v1082_v1 }
 0x350   : > { %v2725_v37 = vpop.eup %2724 }
 0x351   : > { %v1085_v40 = vpop.xlane.xlu1 %1084  ;;  %v1096_v38 = vmul.f32 %v2725_v37, %v3201_v9 }
 0x352   : > { %2726 = vrcp.f32 %v1085_v40 }
 0x353   : > { %v1100_v44 = vpack.c.bf16 %v1096_v38, %v1096_v38 }
 0x355   : > { %v1106_v52 = vunpack.c.l.b16 %v1100_v44 }
 0x358   : > { %v2727_v41 = vpop.eup %2726 }
 0x359   : > { %v1097_v45 = vmul.f32 %v2727_v41, %v3208_v20  ;;  %v1088_v46 = vpop.xlane.xlu1 %1087  ;;  %v1236_v56 = vpop.xlane.xlu0 %1235 }
 0x35a   : > { %v1091_v48 = vpop.xlane.xlu2 %1090  ;;  %2728 = vrcp.f32 %v1088_v46 }
 0x35b   : > { %1459 = vrot.lane.b32.xlu0 %v3097_v51, %s2845_s26  ;;  %v1101_v50 = vpack.c.bf16 %v1097_v45, %v1097_v45  ;;  %2730 = vrcp.f32 %v1091_v48  ;;  %s3568_s26 = scalar_lea.vmem %s3521_s9, %s2991_s0 }
 0x35d   : > { %v1107_v55 = vunpack.c.l.b16 %v1101_v50 }
 0x35f   : > { %v1108_v43 = vpack.c.b16 %v1107_v55, %v1106_v52 }
 0x360   : > { %v2729_v34 = vpop.eup %2728 }
 0x361   : > { %v2731_v57 = vpop.eup %2730  ;;  %v1239_v49 = vpop.xlane.xlu1 %1238  ;;  %2489 = vmatmul.msk.bf16.vlgmr.msrb.gmra.mxu0 %vm1055_vm3, %v1108_v43  ;;  %v1098_v20 = vmul.f32 %v2729_v34, %v3213_v25 }
 0x362   : > { %v1289_v9 = vpop.permute.xlu2 %1288  ;;  %v1099_v62 = vmul.f32 %v2731_v57, %v3217_v24  ;;  %2732 = vrcp.f32 %v1239_v49 }
 0x363   : > { %1301 = vmatpush.bf16.msra.mxu0 %v1289_v9  ;;  %v1102_v47 = vpack.c.bf16 %v1098_v20, %v1098_v20  ;;  %2734 = vrcp.f32 %v1236_v56 }
 0x364   : > { %v1103_v51 = vpack.c.bf16 %v1099_v62, %v1099_v62 }
 0x365   : > { %v1131_v2 = vunpack.c.l.b16 %v1102_v47 }
 0x366   : > { %v1132_v3 = vunpack.c.l.b16 %v1103_v51 }
 0x368   : > { %v1133_v4 = vpack.c.b16 %v1132_v3, %v1131_v2  ;;  %v2733_v6 = vpop.eup %2732 }
 0x369   : > { %v1407_v5 = vpop.xlane.xlu0 %1406  ;;  %v2735_v7 = vpop.eup %2734  ;;  %v1251_v8 = vmul.f32 %v2733_v6, %v3226_v39 }
 0x36a   : > { %2490 = vmatmul.msk.bf16.vlgmr.msra.gmra.mxu3 %vm1055_vm3, %v1133_v4  ;;  %v1250_v25 = vmul.f32 %v2735_v7, %v3215_v29  ;;  %v1606_v18 = vpop.permute.xlu2 %1605 }
 0x36b   : > { %1447 = vmatpush.bf16.msra.mxu3 %v1435_v17  ;;  %v1255_v11 = vpack.c.bf16 %v1251_v8, %v1251_v8 }
 0x36c   : > { %v1254_v54 = vpack.c.bf16 %v1250_v25, %v1250_v25 }
 0x36d   : > { %v1261_v13 = vunpack.c.l.b16 %v1255_v11 }
 0x36e   : > { %v1260_v14 = vunpack.c.l.b16 %v1254_v54 }
 0x370   : > { %v1262_v15 = vpack.c.b16 %v1261_v13, %v1260_v14 }
 0x371   : > { %v1410_v60 = vpop.xlane.xlu1 %1409  ;;  %v1242_v24 = vpop.xlane.xlu0 %1241 }
 0x372   : > { %2736 = vrcp.f32 %v1410_v60 }
 0x373   : > { %2738 = vrcp.f32 %v1242_v24 }
 0x374   : > { %2740 = vrcp.f32 %v1407_v5 }
 0x378   : > { %v2737_v16 = vpop.eup %2736 }
 0x379   : > { %v1245_v63 = vpop.xlane.xlu1 %1244  ;;  %v2739_v21 = vpop.eup %2738  ;;  %v1422_v29 = vmul.f32 %v2737_v16, %v3239_v61 }
 0x37a   : > { %2742 = vrcp.f32 %v1245_v63  ;;  %2493 = vmatmul.msk.bf16.vlgmr.msrb.gmra.mxu3 %vm1055_vm3, %v1262_v15  ;;  %v2741_v39 = vpop.eup %2740  ;;  %v1252_v17 = vmul.f32 %v2739_v21, %v3237_v59 }
 0x37b   : > { %1618 = vmatpush.bf16.msrb.mxu3 %v1606_v18  ;;  %v1421_v22 = vmul.f32 %v2741_v39, %v3232_v53  ;;  %v1426_v26 = vpack.c.bf16 %v1422_v29, %v1422_v29 }
 0x37c   : > { %v1256_v58 = vpack.c.bf16 %v1252_v17, %v1252_v17 }
 0x37d   : > { %v1425_v36 = vpack.c.bf16 %v1421_v22, %v1421_v22  ;;  %v1432_v40 = vunpack.c.l.b16 %v1426_v26 }
 0x37e   : > { %v1285_v37 = vunpack.c.l.b16 %v1256_v58 }
 0x37f   : > { %v1431_v41 = vunpack.c.l.b16 %v1425_v36 }
 0x380   : > { %v2743_v23 = vpop.eup %2742 }
 0x381   : > { %v1253_v33 = vmul.f32 %v2743_v23, %v3247_v0  ;;  %v1433_v45 = vpack.c.b16 %v1432_v40, %v1431_v41  ;;  %v1581_v59 = vpop.xlane.xlu1 %1580  ;;  %v2611_v41 = vld [vmem:[%s3006_s22 + $0x8] sm:$0xff] }
 0x382   : > { %2744 = vrcp.f32 %v1581_v59  ;;  %1709 = vmatpush.bf16.msra.mxu1 %v2611_v41 }
 0x383   : > { %v1257_v1 = vpack.c.bf16 %v1253_v33, %v1253_v33 }
 0x385   : > { %v1286_v38 = vunpack.c.l.b16 %v1257_v1 }
 0x387   : > { %v1287_v44 = vpack.c.b16 %v1286_v38, %v1285_v37 }
 0x388   : > { %v2745_v61 = vpop.eup %2744 }
 0x389   : > { %2494 = vmatmul.msk.bf16.vlgmr.msra.gmra.mxu0 %vm1055_vm3, %v1287_v44  ;;  %v1593_v46 = vmul.f32 %v2745_v61, %v3254_v10  ;;  %v1416_v48 = vpop.xlane.xlu1 %1415  ;;  %v2610_v44 = vld [vmem:[%s3006_s22] sm:$0xff] }
 0x38a   : > { %2497 = vmatmul.msk.bf16.vlgmr.msra.gmra.mxu3 %vm1055_vm3, %v1433_v45  ;;  %1710 = vmatpush.bf16.msra.mxu1 %v2610_v44 }
 0x38b   : > { %v1597_v50 = vpack.c.bf16 %v1593_v46, %v1593_v46 }
 0x38d   : > { %v1603_v34 = vunpack.c.l.b16 %v1597_v50 }
 0x391   : > { %v1584_v62 = vpop.xlane.xlu1 %1583 }
 0x3a3   : > { %v1587_v47 = vpop.xlane.xlu2 %1586 }
 0x3a9   : > { %v1631_v5 = vpop.permute.xlu1 %1630 }
 0x3b2   : > { %v1578_v53 = vpop.xlane.xlu0 %1577 }
 0x3b3   : > { %2746 = vrcp.f32 %v1578_v53 }
 0x3b9   : > { %v2747_v0 = vpop.eup %2746 }
 0x3ba   : > { %v1592_v52 = vmul.f32 %v2747_v0, %v3275_v32  ;;  %v1413_v55 = vpop.xlane.xlu0 %1412 }
 0x3bb   : > { %2748 = vrcp.f32 %v1413_v55 }
 0x3bc   : > { %2750 = vrcp.f32 %v1416_v48  ;;  %v1596_v43 = vpack.c.bf16 %v1592_v52, %v1592_v52 }
 0x3bd   : > { %2752 = vrcp.f32 %v1587_v47 }
 0x3be   : > { %v1602_v56 = vunpack.c.l.b16 %v1596_v43  ;;  %2754 = vrcp.f32 %v1584_v62 }
 0x3c0   : > { %v1604_v57 = vpack.c.b16 %v1603_v34, %v1602_v56  ;;  %v2685_v56 = vld [vmem:[%s3566_s17] ss:$0 sm:$0xff]  ;;  %s3575_s17 = sld [smem:[#allocation21_spill]] (!%p2541_p6) }
 0x3c1   : > { %v2749_v49 = vpop.eup %2748 }
 0x3c2   : > { %v2751_v9 = vpop.eup %2750  ;;  %2501 = vmatmul.msk.bf16.vlgmr.msrb.gmra.mxu3 %vm1055_vm3, %v1604_v57  ;;  %v1423_v20 = vmul.f32 %v2749_v49, %v3279_v35 }
 0x3c3   : > { %v1424_v10 = vmul.f32 %v2751_v9, %v3259_v12  ;;  %v2753_v7 = vpop.eup %2752 }
 0x3c4   : > { %v1427_v51 = vpack.c.bf16 %v1423_v20, %v1423_v20  ;;  %v2755_v8 = vpop.eup %2754  ;;  %v1595_v35 = vmul.f32 %v2753_v7, %v3268_v19 }
 0x3c5   : > { %v1428_v2 = vpack.c.bf16 %v1424_v10, %v1424_v10  ;;  %v1594_v12 = vmul.f32 %v2755_v8, %v3263_v42  ;;  %v2850_v8 = vmov 32.0  }
 0x3c6   : > { %v1456_v32 = vunpack.c.l.b16 %v1427_v51  ;;  %v1599_v25 = vpack.c.bf16 %v1595_v35, %v1595_v35  ;;  %2756 = vrcp.f32 %v2850_v8 }
 0x3c7   : > { %v1457_v3 = vunpack.c.l.b16 %v1428_v2  ;;  %v1598_v11 = vpack.c.bf16 %v1594_v12, %v1594_v12 }
 0x3c8   : > { %v1628_v60 = vunpack.c.l.b16 %v1599_v25 }
 0x3c9   : > { %v1458_v6 = vpack.c.b16 %v1457_v3, %v1456_v32  ;;  %v1627_v24 = vunpack.c.l.b16 %v1598_v11 }
 0x3cb   : > { %v1629_v54 = vpack.c.b16 %v1628_v60, %v1627_v24 }
 0x3cd   : > { %v1460_v4 = vpop.permute.xlu0 %1459 }
 0x3ce   : > { %1472 = vmatpush.bf16.msrb.mxu0 %v1460_v4 }
 0x3d1   : > { %2498 = vmatmul.msk.bf16.vlgmr.msrb.gmra.mxu0 %vm1055_vm3, %v1458_v6 }
 0x3d2   : > { %1643 = vmatpush.bf16.msra.mxu0 %v1631_v5 }
 0x3de   : > { %v1124_v13 = vpop.f32.mrf.mxu0 }
 0x3df   : > { %1154 = vst.msk [vmem:[#allocation3] sm:$0xff] %vm1003_vm2, %v1124_v13 }
 0x3e1   : > { %2502 = vmatmul.msk.bf16.vlgmr.msra.gmra.mxu0 %vm1055_vm3, %v1629_v54 }
 0x3e6   : > { %v1126_v14 = vpop.f32.mrf.mxu0 }
 0x3e7   : > { %1155 = vst.msk [vmem:[#allocation3 + $0x8] sm:$0xff] %vm1003_vm2, %v1126_v14 }
 0x3ed   : > { %v1149_v16 = vpop.f32.mrf.mxu3 }
 0x3ee   : > { %1156 = vst.msk [vmem:[#allocation3 + $0x10] sm:$0xff] %vm1003_vm2, %v1149_v16 }
 0x3f5   : > { %v1151_v63 = vpop.f32.mrf.mxu3 }
 0x3f6   : > { %1157 = vst.msk [vmem:[#allocation3 + $0x18] sm:$0xff] %vm1003_vm2, %v1151_v63 }
 0x3fd   : > { %v1278_v42 = vpop.f32.mrf.mxu3 }
 0x3fe   : > { %1312 = vrot.lane.b32.xlu0 %v1278_v42, %s2847_s28 }
 0x405   : > { %v1280_v19 = vpop.f32.mrf.mxu3 }
 0x406   : > { %v1303_v15 = vpop.f32.mrf.mxu0  ;;  %1314 = vrot.lane.b32.xlu0 %v1280_v19, %s2847_s28 }
 0x407   : > { %1316 = vrot.lane.b32.xlu2 %v1303_v15, %s2847_s28 }
 0x40d   : > { %v1449_v21 = vpop.f32.mrf.mxu3 }
 0x40e   : > { %v1305_v18 = vpop.f32.mrf.mxu0 }
 0x40f   : > { %1318 = vrot.lane.b32.xlu1 %v1305_v18, %s2847_s28  ;;  %s3573_s28 = sld [smem:[#allocation17_spill]] (!%p2541_p6) }
 0x415   : > { %v1451_v39 = vpop.f32.mrf.mxu3 }
 0x416   : > { %1485 = vrot.lane.b32.xlu0 %v1451_v39, %s2848_s6 }
 0x417   : > { %1483 = vrot.lane.b32.xlu1 %v1449_v21, %s2848_s6 }
 0x445   : > { %v1620_v29 = vpop.f32.mrf.mxu3 }
 0x446   : > { %1654 = vrot.lane.b32.xlu1 %v1620_v29, %s2849_s29 }
 0x44d   : > { %v1622_v17 = vpop.f32.mrf.mxu3 }
 0x44e   : > { %1656 = vrot.lane.b32.xlu0 %v1622_v17, %s2849_s29  ;;  %v1474_v22 = vpop.f32.mrf.mxu0 }
 0x456   : > { %1487 = vrot.lane.b32.xlu0 %v1474_v22, %s2848_s6  ;;  %v1476_v23 = vpop.f32.mrf.mxu0 }
 0x457   : > { %1489 = vrot.lane.b32.xlu1 %v1476_v23, %s2848_s6 }
 0x45e   : > { %v1645_v26 = vpop.f32.mrf.mxu0 }
 0x45f   : > { %1658 = vrot.lane.b32.xlu0 %v1645_v26, %s2849_s29 }
 0x461   : > { %v1317_v58 = vpop.permute.xlu2 %1316 }
 0x462   : > { %1327 = vst.msk [vmem:[#allocation3 + $0x10] sm:$0xff] %vm1324_vm4, %v1317_v58 }
 0x466   : > { %v1647_v33 = vpop.f32.mrf.mxu0 }
 0x467   : > { %1660 = vrot.lane.b32.xlu1 %v1647_v33, %s2849_s29 }
 0x470   : > { %v1313_v36 = vpop.permute.xlu0 %1312 }
 0x471   : > { %1325 = vst.msk [vmem:[#allocation3] sm:$0xff] %vm1324_vm4, %v1313_v36 }
 0x478   : > { %v1315_v1 = vpop.permute.xlu0 %1314 }
 0x479   : > { %1326 = vst.msk [vmem:[#allocation3 + $0x8] sm:$0xff] %vm1324_vm4, %v1315_v1  ;;  %v2613_v1 = vld [vmem:[%s3023_s2 + $0x8] sm:$0xff] }
 0x47a   : > { %1871 = vmatpush.bf16.msra.mxu2 %v2613_v1 }
 0x481   : > { %v1319_v40 = vpop.permute.xlu1 %1318 }
 0x482   : > { %1328 = vst.msk [vmem:[#allocation3 + $0x18] sm:$0xff] %vm1324_vm4, %v1319_v40 }
 0x488   : > { %v1486_v37 = vpop.permute.xlu0 %1485 }
 0x489   : > { %v1484_v38 = vpop.permute.xlu1 %1483  ;;  %1497 = vst.msk [vmem:[#allocation3 + $0x8] sm:$0xff] %vm1495_vm5, %v1486_v37  ;;  %v2612_v37 = vld [vmem:[%s3023_s2] sm:$0xff] }
 0x48a   : > { %1496 = vst.msk [vmem:[#allocation3] sm:$0xff] %vm1495_vm5, %v1484_v38  ;;  %1872 = vmatpush.bf16.msra.mxu2 %v2612_v37 }
 0x4b8   : > { %v1655_v45 = vpop.permute.xlu1 %1654 }
 0x4b9   : > { %1667 = vst.msk [vmem:[#allocation3] sm:$0xff] %vm1666_vm6, %v1655_v45 }
 0x4c0   : > { %v1657_v59 = vpop.permute.xlu0 %1656  ;;  %v1671_v61 = vld [vmem:[#allocation3] sm:$0xff] }
 0x4c1   : > { %1668 = vst.msk [vmem:[#allocation3 + $0x8] sm:$0xff] %vm1666_vm6, %v1657_v59 }
 0x4c8   : > { %v1488_v53 = vpop.permute.xlu0 %1487  ;;  %v1672_v46 = vld [vmem:[#allocation3 + $0x8] sm:$0xff] }
 0x4c9   : > { %1498 = vst.msk [vmem:[#allocation3 + $0x10] sm:$0xff] %vm1495_vm5, %v1488_v53  ;;  %v1490_v0 = vpop.permute.xlu1 %1489  ;;  %v1675_v48 = vpack.c.bf16 %v1672_v46, %v1671_v61 }
 0x4ca   : > { %1499 = vst.msk [vmem:[#allocation3 + $0x18] sm:$0xff] %vm1495_vm5, %v1490_v0  ;;  %vm1926_vm5 = vcmask 523264  }
 0x4cb   : > { %2511 = vmatmul.msk.bf16.vlgmr.msra.gmra.mxu1 %vm966_vm1, %v1675_v48 }
 0x4d1   : > { %v1659_v50 = vpop.permute.xlu0 %1658 }
 0x4d2   : > { %1669 = vst.msk [vmem:[#allocation3 + $0x10] sm:$0xff] %vm1666_vm6, %v1659_v50 }
 0x4d9   : > { %v1661_v52 = vpop.permute.xlu1 %1660  ;;  %v1673_v55 = vld [vmem:[#allocation3 + $0x10] sm:$0xff] }
 0x4da   : > { %1670 = vst.msk [vmem:[#allocation3 + $0x18] sm:$0xff] %vm1666_vm6, %v1661_v52 }
 0x4e1   : > { %v1674_v43 = vld [vmem:[#allocation3 + $0x18] sm:$0xff] }
 0x4e2   : > { %v1676_v34 = vpack.c.bf16 %v1674_v43, %v1673_v55 }
 0x4e4   : > { %2512 = vmatmul.msk.bf16.gmra.mxu1 %vm966_vm1, %v1676_v34 }
 0x548   : > { %v1712_v57 = vpop.f32.mrf.mxu1 }
 0x549   : > { %v1713_v49 = vadd.f32 %v2685_v56, %v1712_v57 }
 0x54b   : > { %v1722_v9 = vadd.f32 %v1713_v49, %v3074_v27  ;;  %v2686_v49 = vld [vmem:[%s3567_s5] ss:$0 sm:$0xff]  ;;  %s3572_s5 = smov (!%p2541_p6), %s3571_s3 }
 0x54d   : > { %v1726_v20 = vsel %vm966_vm1, %v1722_v9, 0.0 }
 0x54e   : > { %1727 = vadd.xlane.f32.xlu0 %v1726_v20 }
 0x550   : > { %v1714_v10 = vpop.f32.mrf.mxu1 }
 0x551   : > { %v1715_v62 = vadd.f32 %v2685_v56, %v1714_v10 }
 0x553   : > { %v1723_v47 = vadd.f32 %v1715_v62, %v3076_v28  ;;  %v2757_v28 = vpop.eup %2756 }
 0x554   : > { %v1739_v35 = vmul.f32 32.0, %v2757_v28  ;;  %vm1743_vm7 = vweird.f32 %v2757_v28 }
 0x555   : > { %v1729_v51 = vsel %vm966_vm1, %v1723_v47, 0.0 }
 0x556   : > { %1730 = vadd.xlane.f32.xlu2 %v1729_v51  ;;  %v1740_v12 = vsub.f32 1.0, %v1739_v35 }
 0x558   : > { %v1741_v25 = vmul.f32 %v2757_v28, %v1740_v12 }
 0x55a   : > { %v1742_v11 = vadd.f32 %v2757_v28, %v1741_v25 }
 0x55c   : > { %v3338_v60 = vsel %vm1743_vm7, %v2757_v28, %v1742_v11 }
 0x561   : > { %v1717_v2 = vpop.f32.mrf.mxu1 }
 0x562   : > { %v1718_v32 = vadd.f32 %v2685_v56, %v1717_v2 }
 0x564   : > { %v1724_v3 = vadd.f32 %v1718_v32, %v3081_v30 }
 0x566   : > { %v1732_v4 = vsel %vm966_vm1, %v1724_v3, 0.0 }
 0x567   : > { %1733 = vadd.xlane.f32.xlu1 %v1732_v4 }
 0x569   : > { %v1719_v5 = vpop.f32.mrf.mxu1 }
 0x56a   : > { %v1720_v6 = vadd.f32 %v2685_v56, %v1719_v5 }
 0x56c   : > { %v1725_v27 = vadd.f32 %v1720_v6, %v3083_v31 }
 0x56e   : > { %v1735_v7 = vsel %vm966_vm1, %v1725_v27, 0.0 }
 0x56f   : > { %1736 = vadd.xlane.f32.xlu0 %v1735_v7 }
 0x5c1   : > { %v1728_v30 = vpop.xlane.xlu0 %1727 }
 0x5c2   : > { %v1745_v24 = vmul.f32 %v3338_v60, %v1728_v30 }
 0x5c4   : > { %v1749_v54 = vsub.f32 %v1722_v9, %v1745_v24 }
 0x5c6   : > { %v1753_v13 = vmul.f32 %v1749_v54, %v1749_v54 }
 0x5c8   : > { %v1757_v31 = vsel %vm966_vm1, %v1753_v13, 0.0 }
 0x5c9   : > { %v1731_v14 = vpop.xlane.xlu2 %1730  ;;  %1758 = vadd.xlane.f32.xlu2 %v1757_v31 }
 0x5ca   : > { %v1746_v16 = vmul.f32 %v3338_v60, %v1731_v14 }
 0x5cc   : > { %v1750_v63 = vsub.f32 %v1723_v47, %v1746_v16  ;;  %v2687_v47 = vld [vmem:[%s3568_s26] ss:$0 sm:$0xff] }
 0x5ce   : > { %v1754_v42 = vmul.f32 %v1750_v63, %v1750_v63 }
 0x5d0   : > { %v1760_v19 = vsel %vm966_vm1, %v1754_v42, 0.0 }
 0x5d1   : > { %1761 = vadd.xlane.f32.xlu1 %v1760_v19 }
 0x5da   : > { %v1734_v15 = vpop.xlane.xlu1 %1733 }
 0x5db   : > { %v1747_v21 = vmul.f32 %v3338_v60, %v1734_v15 }
 0x5dd   : > { %v3345_v18 = vsub.f32 %v1724_v3, %v1747_v21 }
 0x5df   : > { %v1755_v39 = vmul.f32 %v3345_v18, %v3345_v18 }
 0x5e1   : > { %v1763_v29 = vsel %vm966_vm1, %v1755_v39, 0.0 }
 0x5e2   : > { %1764 = vadd.xlane.f32.xlu0 %v1763_v29  ;;  %v1737_v17 = vpop.xlane.xlu0 %1736 }
 0x5e3   : > { %v1748_v22 = vmul.f32 %v3338_v60, %v1737_v17 }
 0x5e5   : > { %v3351_v23 = vsub.f32 %v1725_v27, %v1748_v22  ;;  %v2617_v22 = vld [vmem:[%s3033_s19 + $0x18] sm:$0xff] }
 0x5e6   : > { %1937 = vmatpush.bf16.msra.mxu3 %v2617_v22 }
 0x5e7   : > { %v1756_v26 = vmul.f32 %v3351_v23, %v3351_v23 }
 0x5e9   : > { %v1766_v58 = vsel %vm966_vm1, %v1756_v26, 0.0  ;;  %v2616_v26 = vld [vmem:[%s3033_s19 + $0x10] sm:$0xff] }
 0x5ea   : > { %1767 = vadd.xlane.f32.xlu2 %v1766_v58  ;;  %1938 = vmatpush.bf16.msra.mxu3 %v2616_v26  ;;  %v2614_v58 = vld [vmem:[%s3033_s19] sm:$0xff] }
 0x63c   : > { %v1759_v33 = vpop.xlane.xlu2 %1758 }
 0x63d   : > { %v1769_v36 = vmul.f32 %v1759_v33, %v3338_v60 }
 0x63f   : > { %v1773_v40 = vadd.f32 1e-05, %v1769_v36 }
 0x641   : > { %2758 = vrsqrt.f32 %v1773_v40  ;;  %vm1783_vm9 = vweird.f32 %v1773_v40 }
 0x644   : > { %v1762_v38 = vpop.xlane.xlu1 %1761 }
 0x645   : > { %v1770_v41 = vmul.f32 %v1762_v38, %v3338_v60 }
 0x647   : > { %v2759_v44 = vpop.eup %2758  ;;  %v1774_v45 = vadd.f32 1e-05, %v1770_v41 }
 0x648   : > { %v1778_v59 = vmul.f32 %v2759_v44, %v1773_v40  ;;  %vm1784_vm8 = vweird.f32 %v2759_v44 }
 0x649   : > { %2760 = vrsqrt.f32 %v1774_v45  ;;  %vm1785_vm10 = vmor %vm1783_vm9, %vm1784_vm8  ;;  %vm1793_vm12 = vweird.f32 %v1774_v45 }
 0x64a   : > { %v1779_v53 = vmul.f32 %v2759_v44, %v1778_v59 }
 0x64c   : > { %v1780_v61 = vmul.f32 0.5, %v1779_v53 }
 0x64e   : > { %v1781_v46 = vsub.f32 1.5, %v1780_v61 }
 0x64f   : > { %v2761_v0 = vpop.eup %2760 }
 0x650   : > { %v1782_v48 = vmul.f32 %v2759_v44, %v1781_v46  ;;  %v1788_v50 = vmul.f32 %v2761_v0, %v1774_v45  ;;  %vm1794_vm11 = vweird.f32 %v2761_v0 }
 0x651   : > { %vm1795_vm13 = vmor %vm1793_vm12, %vm1794_vm11 }
 0x652   : > { %v1789_v52 = vmul.f32 %v2761_v0, %v1788_v50  ;;  %v1786_v55 = vsel %vm1785_vm10, %v2759_v44, %v1782_v48  ;;  %v2689_v48 = vld [vmem:[%s877_s1] ss:$0 sm:$0xff] }
 0x653   : > { %v1817_v9 = vmul.f32 %v1786_v55, %v1749_v54 }
 0x654   : > { %v1790_v43 = vmul.f32 0.5, %v1789_v52 }
 0x655   : > { %v1765_v34 = vpop.xlane.xlu0 %1764  ;;  %v1825_v51 = vmul.f32 %v2686_v49, %v1817_v9 }
 0x656   : > { %v1791_v56 = vsub.f32 1.5, %v1790_v43  ;;  %v1771_v57 = vmul.f32 %v1765_v34, %v3338_v60 }
 0x657   : > { %v3372_v5 = vadd.f32 %v2687_v47, %v1825_v51 }
 0x658   : > { %v1792_v20 = vmul.f32 %v2761_v0, %v1791_v56  ;;  %v1775_v10 = vadd.f32 1e-05, %v1771_v57 }
 0x65a   : > { %v1796_v62 = vsel %vm1795_vm13, %v2761_v0, %v1792_v20  ;;  %2762 = vrsqrt.f32 %v1775_v10  ;;  %vm1803_vm15 = vweird.f32 %v1775_v10 }
 0x65b   : > { %v1818_v2 = vmul.f32 %v1796_v62, %v1750_v63 }
 0x65d   : > { %v1826_v32 = vmul.f32 %v2686_v49, %v1818_v2  ;;  %v1768_v3 = vpop.xlane.xlu2 %1767 }
 0x65e   : > { %v1772_v4 = vmul.f32 %v1768_v3, %v3338_v60 }
 0x65f   : > { %v3374_v6 = vadd.f32 %v2687_v47, %v1826_v32 }
 0x660   : > { %v2763_v27 = vpop.eup %2762  ;;  %v1776_v7 = vadd.f32 1e-05, %v1772_v4 }
 0x661   : > { %v1798_v8 = vmul.f32 %v2763_v27, %v1775_v10  ;;  %v1837_v28 = vpack.c.bf16 %v3374_v6, %v3372_v5  ;;  %vm1804_vm14 = vweird.f32 %v2763_v27 }
 0x662   : > { %2764 = vrsqrt.f32 %v1776_v7  ;;  %vm1805_vm0 = vmor %vm1803_vm15, %vm1804_vm14  ;;  %vm1813_vm3 = vweird.f32 %v1776_v7 }
 0x663   : > { %v1799_v35 = vmul.f32 %v2763_v27, %v1798_v8  ;;  %2521 = vmatmul.msk.bf16.vlgmr.msra.gmra.mxu2 %vm966_vm1, %v1837_v28 }
 0x665   : > { %v1800_v12 = vmul.f32 0.5, %v1799_v35 }
 0x667   : > { %v1801_v25 = vsub.f32 1.5, %v1800_v12 }
 0x668   : > { %v2765_v11 = vpop.eup %2764 }
 0x669   : > { %v1802_v30 = vmul.f32 %v2763_v27, %v1801_v25  ;;  %v1808_v24 = vmul.f32 %v2765_v11, %v1776_v7  ;;  %vm1814_vm2 = vweird.f32 %v2765_v11 }
 0x66a   : > { %vm1815_vm4 = vmor %vm1813_vm3, %vm1814_vm2 }
 0x66b   : > { %v1809_v54 = vmul.f32 %v2765_v11, %v1808_v24  ;;  %v1806_v13 = vsel %vm1805_vm0, %v2763_v27, %v1802_v30 }
 0x66c   : > { %v1819_v16 = vmul.f32 %v1806_v13, %v3345_v18  ;;  %v2615_v18 = vld [vmem:[%s3033_s19 + $0x8] sm:$0xff] }
 0x66d   : > { %v1810_v31 = vmul.f32 0.5, %v1809_v54  ;;  %1939 = vmatpush.bf16.msra.mxu3 %v2615_v18 }
 0x66e   : > { %v1827_v15 = vmul.f32 %v2686_v49, %v1819_v16 }
 0x66f   : > { %v1811_v14 = vsub.f32 1.5, %v1810_v31 }
 0x670   : > { %v1835_v39 = vadd.f32 %v2687_v47, %v1827_v15 }
 0x671   : > { %v1812_v63 = vmul.f32 %v2765_v11, %v1811_v14  ;;  %1940 = vmatpush.bf16.msra.mxu3 %v2614_v58 }
 0x673   : > { %v1816_v42 = vsel %vm1815_vm4, %v2765_v11, %v1812_v63 }
 0x674   : > { %v1820_v19 = vmul.f32 %v1816_v42, %v3351_v23  ;;  %v2688_v23 = vld [vmem:[%s869_s4] ss:$0 sm:$0xff] }
 0x676   : > { %v1828_v21 = vmul.f32 %v2686_v49, %v1820_v19 }
 0x678   : > { %v1836_v29 = vadd.f32 %v2687_v47, %v1828_v21 }
 0x67a   : > { %v1838_v17 = vpack.c.bf16 %v1836_v29, %v1835_v39 }
 0x67c   : > { %2522 = vmatmul.msk.bf16.gmra.mxu2 %vm966_vm1, %v1838_v17 }
 0x6e6   : > { %v1874_v33 = vpop.f32.mrf.mxu2 }
 0x6e7   : > { %v1875_v36 = vadd.f32 %v2688_v23, %v1874_v33 }
 0x6e9   : > { %v1884_v37 = vmax.f32 %v1875_v36, 0.0 }
 0x6ee   : > { %v1876_v1 = vpop.f32.mrf.mxu2 }
 0x6ef   : > { %v1877_v40 = vadd.f32 %v2688_v23, %v1876_v1  ;;  %v2690_v1 = vld [vmem:[%s880_s25] ss:$0 sm:$0xff] }
 0x6f1   : > { %v1885_v38 = vmax.f32 %v1877_v40, 0.0 }
 0x6f3   : > { %v1888_v41 = vpack.c.bf16 %v1885_v38, %v1884_v37  ;;  %v2691_v38 = vld [vmem:[%s3569_s24] ss:$0 sm:$0xff]  ;;  %s3574_s24 = sld [smem:[#allocation19_spill]] (!%p2541_p6) }
 0x6f5   : > { %2539 = vmatmul.msk.bf16.vlgmr.msra.gmra.mxu3 %vm1926_vm5, %v1888_v41 }
 0x6ff   : > { %v1879_v44 = vpop.f32.mrf.mxu2 }
 0x700   : > { %v1880_v45 = vadd.f32 %v2688_v23, %v1879_v44 }
 0x702   : > { %v1886_v61 = vmax.f32 %v1880_v45, 0.0 }
 0x707   : > { %v1881_v59 = vpop.f32.mrf.mxu2 }
 0x708   : > { %v1882_v53 = vadd.f32 %v2688_v23, %v1881_v59 }
 0x70a   : > { %v1887_v46 = vmax.f32 %v1882_v53, 0.0 }
 0x70c   : > { %v1889_v0 = vpack.c.bf16 %v1887_v46, %v1886_v61 }
 0x70e   : > { %2540 = vmatmul.msk.bf16.gmra.mxu3 %vm1926_vm5, %v1889_v0 }
 0x778   : > { %v1942_v50 = vpop.f32.mrf.mxu3 }
 0x779   : > { %v1943_v52 = vadd.f32 %v2689_v48, %v1942_v50 }
 0x77b   : > { %v1952_v55 = vadd.f32 %v1943_v52, %v3372_v5 }
 0x77d   : > { %v1956_v43 = vsel %vm966_vm1, %v1952_v55, 0.0 }
 0x77e   : > { %1957 = vadd.xlane.f32.xlu1 %v1956_v43 }
 0x780   : > { %v1944_v34 = vpop.f32.mrf.mxu3 }
 0x781   : > { %v1945_v56 = vadd.f32 %v2689_v48, %v1944_v34 }
 0x783   : > { %v1953_v57 = vadd.f32 %v1945_v56, %v3374_v6 }
 0x785   : > { %v1959_v49 = vsel %vm966_vm1, %v1953_v57, 0.0 }
 0x786   : > { %1960 = vadd.xlane.f32.xlu0 %v1959_v49 }
 0x791   : > { %v1947_v9 = vpop.f32.mrf.mxu3 }
 0x792   : > { %v1948_v20 = vadd.f32 %v2689_v48, %v1947_v9 }
 0x794   : > { %v1954_v10 = vadd.f32 %v1948_v20, %v1835_v39 }
 0x796   : > { %v1962_v62 = vsel %vm966_vm1, %v1954_v10, 0.0 }
 0x797   : > { %1963 = vadd.xlane.f32.xlu2 %v1962_v62 }
 0x799   : > { %v1949_v47 = vpop.f32.mrf.mxu3 }
 0x79a   : > { %v1950_v51 = vadd.f32 %v2689_v48, %v1949_v47 }
 0x79c   : > { %v1955_v2 = vadd.f32 %v1950_v51, %v1836_v29 }
 0x79e   : > { %v1965_v32 = vsel %vm966_vm1, %v1955_v2, 0.0 }
 0x79f   : > { %1966 = vadd.xlane.f32.xlu1 %v1965_v32 }
 0x7f1   : > { %v1958_v3 = vpop.xlane.xlu1 %1957 }
 0x7f2   : > { %v1968_v4 = vmul.f32 %v1958_v3, %v3338_v60 }
 0x7f4   : > { %v1972_v5 = vsub.f32 %v1952_v55, %v1968_v4 }
 0x7f6   : > { %v1976_v6 = vmul.f32 %v1972_v5, %v1972_v5 }
 0x7f8   : > { %v1980_v27 = vsel %vm966_vm1, %v1976_v6, 0.0 }
 0x7f9   : > { %1981 = vadd.xlane.f32.xlu0 %v1980_v27  ;;  %v1961_v7 = vpop.xlane.xlu0 %1960 }
 0x7fa   : > { %v1969_v8 = vmul.f32 %v1961_v7, %v3338_v60 }
 0x7fc   : > { %v1973_v28 = vsub.f32 %v1953_v57, %v1969_v8 }
 0x7fe   : > { %v1977_v35 = vmul.f32 %v1973_v28, %v1973_v28 }
 0x800   : > { %v1983_v12 = vsel %vm966_vm1, %v1977_v35, 0.0 }
 0x801   : > { %1984 = vadd.xlane.f32.xlu2 %v1983_v12 }
 0x80a   : > { %v1964_v25 = vpop.xlane.xlu2 %1963 }
 0x80b   : > { %v1970_v11 = vmul.f32 %v1964_v25, %v3338_v60 }
 0x80d   : > { %v3409_v30 = vsub.f32 %v1954_v10, %v1970_v11 }
 0x80f   : > { %v1978_v24 = vmul.f32 %v3409_v30, %v3409_v30 }
 0x811   : > { %v1986_v54 = vsel %vm966_vm1, %v1978_v24, 0.0 }
 0x812   : > { %v1967_v13 = vpop.xlane.xlu1 %1966  ;;  %1987 = vadd.xlane.f32.xlu1 %v1986_v54 }
 0x813   : > { %v1971_v31 = vmul.f32 %v1967_v13, %v3338_v60 }
 0x815   : > { %v3415_v14 = vsub.f32 %v1955_v2, %v1971_v31 }
 0x817   : > { %v1979_v16 = vmul.f32 %v3415_v14, %v3415_v14 }
 0x819   : > { %v1989_v63 = vsel %vm966_vm1, %v1979_v16, 0.0 }
 0x81a   : > { %1990 = vadd.xlane.f32.xlu0 %v1989_v63 }
 0x86c   : > { %v1982_v42 = vpop.xlane.xlu0 %1981 }
 0x86d   : > { %v1992_v19 = vmul.f32 %v1982_v42, %v3338_v60 }
 0x86f   : > { %v1996_v15 = vadd.f32 1e-05, %v1992_v19 }
 0x871   : > { %2766 = vrsqrt.f32 %v1996_v15  ;;  %vm2006_vm7 = vweird.f32 %v1996_v15 }
 0x874   : > { %v1985_v21 = vpop.xlane.xlu2 %1984 }
 0x875   : > { %v1993_v39 = vmul.f32 %v1985_v21, %v3338_v60 }
 0x877   : > { %v2767_v29 = vpop.eup %2766  ;;  %v1997_v17 = vadd.f32 1e-05, %v1993_v39 }
 0x878   : > { %v2001_v22 = vmul.f32 %v2767_v29, %v1996_v15  ;;  %vm2007_vm6 = vweird.f32 %v2767_v29 }
 0x879   : > { %2768 = vrsqrt.f32 %v1997_v17  ;;  %vm2008_vm8 = vmor %vm2006_vm7, %vm2007_vm6  ;;  %vm2016_vm10 = vweird.f32 %v1997_v17 }
 0x87a   : > { %v2002_v26 = vmul.f32 %v2767_v29, %v2001_v22 }
 0x87c   : > { %v2003_v18 = vmul.f32 0.5, %v2002_v26 }
 0x87e   : > { %v2004_v58 = vsub.f32 1.5, %v2003_v18 }
 0x87f   : > { %v2769_v33 = vpop.eup %2768 }
 0x880   : > { %v2005_v23 = vmul.f32 %v2767_v29, %v2004_v58  ;;  %v2011_v36 = vmul.f32 %v2769_v33, %v1997_v17  ;;  %vm2017_vm9 = vweird.f32 %v2769_v33 }
 0x881   : > { %vm2018_vm11 = vmor %vm2016_vm10, %vm2017_vm9 }
 0x882   : > { %v2009_v40 = vsel %vm2008_vm8, %v2767_v29, %v2005_v23  ;;  %v2012_v37 = vmul.f32 %v2769_v33, %v2011_v36 }
 0x883   : > { %v2040_v41 = vmul.f32 %v2009_v40, %v1972_v5 }
 0x884   : > { %v2013_v44 = vmul.f32 0.5, %v2012_v37 }
 0x885   : > { %v2048_v45 = vmul.f32 %v2690_v1, %v2040_v41  ;;  %v1988_v59 = vpop.xlane.xlu1 %1987 }
 0x886   : > { %v2014_v53 = vsub.f32 1.5, %v2013_v44  ;;  %v1994_v61 = vmul.f32 %v1988_v59, %v3338_v60 }
 0x887   : > { %v2056_v46 = vadd.f32 %v2691_v38, %v2048_v45 }
 0x888   : > { %v2015_v0 = vmul.f32 %v2769_v33, %v2014_v53  ;;  %v1998_v48 = vadd.f32 1e-05, %v1994_v61 }
 0x889   : > { %2060 = vst.msk [vmem:[#allocation2] sm:$0xff] %vm966_vm1, %v2056_v46 }
 0x88a   : > { %v2019_v50 = vsel %vm2018_vm11, %v2769_v33, %v2015_v0  ;;  %2770 = vrsqrt.f32 %v1998_v48  ;;  %vm2026_vm13 = vweird.f32 %v1998_v48 }
 0x88b   : > { %v2041_v52 = vmul.f32 %v2019_v50, %v1973_v28 }
 0x88d   : > { %v2049_v55 = vmul.f32 %v2690_v1, %v2041_v52  ;;  %v1991_v43 = vpop.xlane.xlu0 %1990 }
 0x88e   : > { %v1995_v34 = vmul.f32 %v1991_v43, %v3338_v60 }
 0x88f   : > { %v2057_v56 = vadd.f32 %v2691_v38, %v2049_v55 }
 0x890   : > { %v2771_v57 = vpop.eup %2770  ;;  %v1999_v49 = vadd.f32 1e-05, %v1995_v34 }
 0x891   : > { %2061 = vst.msk [vmem:[#allocation2 + $0x8] sm:$0xff] %vm966_vm1, %v2057_v56  ;;  %v2021_v9 = vmul.f32 %v2771_v57, %v1998_v48  ;;  %vm2027_vm12 = vweird.f32 %v2771_v57 }
 0x892   : > { %2772 = vrsqrt.f32 %v1999_v49  ;;  %vm2028_vm14 = vmor %vm2026_vm13, %vm2027_vm12  ;;  %vm2036_vm0 = vweird.f32 %v1999_v49 }
 0x893   : > { %v2022_v20 = vmul.f32 %v2771_v57, %v2021_v9 }
 0x895   : > { %v2023_v10 = vmul.f32 0.5, %v2022_v20 }
 0x897   : > { %v2024_v62 = vsub.f32 1.5, %v2023_v10 }
 0x898   : > { %v2773_v47 = vpop.eup %2772 }
 0x899   : > { %v2025_v51 = vmul.f32 %v2771_v57, %v2024_v62  ;;  %v2031_v2 = vmul.f32 %v2773_v47, %v1999_v49  ;;  %vm2037_vm15 = vweird.f32 %v2773_v47 }
 0x89a   : > { %vm2038_vm2 = vmor %vm2036_vm0, %vm2037_vm15 }
 0x89b   : > { %v2029_v32 = vsel %vm2028_vm14, %v2771_v57, %v2025_v51  ;;  %v2032_v3 = vmul.f32 %v2773_v47, %v2031_v2 }
 0x89c   : > { %v2042_v60 = vmul.f32 %v2029_v32, %v3409_v30 }
 0x89d   : > { %v2033_v4 = vmul.f32 0.5, %v2032_v3 }
 0x89e   : > { %v2050_v5 = vmul.f32 %v2690_v1, %v2042_v60 }
 0x89f   : > { %v2034_v6 = vsub.f32 1.5, %v2033_v4 }
 0x8a0   : > { %v2058_v27 = vadd.f32 %v2691_v38, %v2050_v5 }
 0x8a1   : > { %v2035_v7 = vmul.f32 %v2773_v47, %v2034_v6 }
 0x8a2   : > { %2062 = vst.msk [vmem:[#allocation2 + $0x10] sm:$0xff] %vm966_vm1, %v2058_v27 }
 0x8a3   : > { %v2039_v8 = vsel %vm2038_vm2, %v2773_v47, %v2035_v7 }
 0x8a4   : > { %v2043_v28 = vmul.f32 %v2039_v8, %v3415_v14 }
 0x8a6   : > { %v2051_v35 = vmul.f32 %v2690_v1, %v2043_v28  ;;  %2067 = sbr.rel (%p2541_p6) target bundleno = 2650 (0xa5a), region = 116 }
 0x8a8   : > { %v2059_v12 = vadd.f32 %v2691_v38, %v2051_v35 }
 0x8aa   : > { %2063 = vst.msk [vmem:[#allocation2 + $0x18] sm:$0xff] %vm966_vm1, %v2059_v12 }
 0x8ab   : > { %v2619_v25 = vld [vmem:[%s3528_s16 + $0x8] sm:$0xff]  ;;  %v2068_v11 = vsel %vm966_vm1, %v2056_v46, 0.0  ;;  %v2069_v30 = vsel %vm966_vm1, %v2057_v56, 0.0  ;;  %v2077_v24 = vsel %vm966_vm1, %v2058_v27, 0.0  ;;  %v2078_v54 = vsel %vm966_vm1, %v2059_v12, 0.0  ;;  %v2627_v14 = vld [vmem:[%s3570_s20 + $0x38] sm:$0xff] }
 0x8ac   : > { %v2070_v13 = vadd.f32 %v2069_v30, %v2068_v11  ;;  %v2079_v31 = vadd.f32 %v2078_v54, %v2077_v24  ;;  %2133 = vmatpush.bf16.msra.mxu0 %v2619_v25  ;;  %v2618_v16 = vld [vmem:[%s3528_s16] sm:$0xff]  ;;  %v2851_v63 = vmov 16.0   ;;  %2210 = vmatpush.bf16.msra.mxu1 %v2627_v14  ;;  %v2626_v15 = vld [vmem:[%s3570_s20 + $0x30] sm:$0xff]  ;;  %v2625_v22 = vld [vmem:[%s3570_s20 + $0x28] sm:$0xff]  ;;  %vm2109_vm4 = vcmask 1041409  }
 0x8ad   : > { %2777 = vrcp.f32 %v2851_v63  ;;  %v2624_v40 = vld [vmem:[%s3570_s20 + $0x20] sm:$0xff]  ;;  %v2623_v45 = vld [vmem:[%s3570_s20 + $0x18] sm:$0xff]  ;;  %v2622_v46 = vld [vmem:[%s3570_s20 + $0x10] sm:$0xff] }
 0x8ae   : > { %v2071_v42 = vrot.slane %v2070_v13, 4  ;;  %v2080_v19 = vrot.slane %v2079_v31, 4  ;;  %v2621_v34 = vld [vmem:[%s3570_s20 + $0x8] sm:$0xff]  ;;  %v2620_v56 = vld [vmem:[%s3570_s20] sm:$0xff]  ;;  %v2631_v57 = vld [vmem:[%s3571_s3 + $0x18] sm:$0xff] }
 0x8af   : > { %2268 = vmatpush.bf16.msra.mxu2 %v2631_v57  ;;  %v2630_v49 = vld [vmem:[%s3572_s5 + $0x10] sm:$0xff]  ;;  %v2774_v9 = vld [vmem:[%s3573_s28] ss:$0 sm:$0xff]  ;;  %v2629_v2 = vld [vmem:[%s3572_s5 + $0x8] sm:$0xff] }
 0x8b0   : > { %v2072_v21 = vadd.f32 %v2071_v42, %v2070_v13  ;;  %v2081_v39 = vadd.f32 %v2080_v19, %v2079_v31  ;;  %2134 = vmatpush.bf16.msra.mxu0 %v2618_v16  ;;  %2211 = vmatpush.bf16.msra.mxu1 %v2626_v15  ;;  %v2628_v32 = vld [vmem:[%s3572_s5] sm:$0xff] }
 0x8b1   : > { %v2775_v3 = vld [vmem:[%s3574_s24] ss:$0 sm:$0xff] }
 0x8b2   : > { %v2073_v29 = vrot.slane %v2072_v21, 2  ;;  %v2082_v17 = vrot.slane %v2081_v39, 2  ;;  %v2776_v7 = vld [vmem:[%s3575_s17] ss:$0 sm:$0xff] }
 0x8b3   : > { %v2778_v26 = vpop.eup %2777  ;;  %2269 = vmatpush.bf16.msra.mxu2 %v2630_v49 }
 0x8b4   : > { %v2074_v18 = vadd.f32 %v2073_v29, %v2072_v21  ;;  %v2083_v58 = vadd.f32 %v2082_v17, %v2081_v39  ;;  %v2087_v33 = vmul.f32 16.0, %v2778_v26  ;;  %2212 = vmatpush.bf16.msra.mxu1 %v2625_v22  ;;  %vm2091_vm3 = vweird.f32 %v2778_v26 }
 0x8b6   : > { %v2075_v23 = vrot.slane %v2074_v18, 1  ;;  %v2084_v36 = vrot.slane %v2083_v58, 1  ;;  %v2088_v1 = vsub.f32 1.0, %v2087_v33 }
 0x8b7   : > { %2270 = vmatpush.bf16.msra.mxu2 %v2629_v2 }
 0x8b8   : > { %v2089_v37 = vmul.f32 %v2778_v26, %v2088_v1  ;;  %v2076_v38 = vadd.f32 %v2075_v23, %v2074_v18  ;;  %v2085_v41 = vadd.f32 %v2084_v36, %v2083_v58  ;;  %2213 = vmatpush.bf16.msra.mxu1 %v2624_v40 }
 0x8ba   : > { %v2090_v44 = vadd.f32 %v2778_v26, %v2089_v37 }
 0x8bb   : > { %2271 = vmatpush.bf16.msra.mxu2 %v2628_v32 }
 0x8bc   : > { %v2092_v59 = vsel %vm2091_vm3, %v2778_v26, %v2090_v44  ;;  %2214 = vmatpush.bf16.msra.mxu1 %v2623_v45 }
 0x8bd   : > { %v2093_v53 = vmul.f32 %v2092_v59, %v2076_v38  ;;  %v2094_v61 = vmul.f32 %v2092_v59, %v2085_v41 }
 0x8bf   : > { %v2095_v0 = vpack.c.bf16 %v2093_v53, %v2093_v53  ;;  %v2096_v48 = vpack.c.bf16 %v2094_v61, %v2094_v61 }
 0x8c0   : > { %2215 = vmatpush.bf16.msra.mxu1 %v2622_v46 }
 0x8c1   : > { %v2107_v50 = vunpack.c.l.b16 %v2095_v0  ;;  %v2108_v52 = vunpack.c.l.b16 %v2096_v48 }
 0x8c3   : > { %v2110_v55 = vsel %vm2109_vm4, %v2108_v52, %v2107_v50 }
 0x8c4   : > { %v2111_v43 = vpack.c.b16 %v2110_v55, %v2110_v55  ;;  %2216 = vmatpush.bf16.msra.mxu1 %v2621_v34 }
 0x8c6   : > { %2550 = vmatmul.msk.bf16.vlgmr.msra.gmra.mxu0 %vm966_vm1, %v2111_v43  ;;  %vm2277_vm1 = vcmask 33792  }
 0x8c8   : > { %2217 = vmatpush.bf16.msra.mxu1 %v2620_v56 }
 0x943   : > { %v2136_v20 = vpop.f32.mrf.mxu0 }
 0x944   : > { %v2137_v10 = vadd.f32 %v2774_v9, %v2136_v20 }
 0x946   : > { %v2140_v62 = vmax.f32 %v2137_v10, 0.0 }
 0x948   : > { %v2141_v47 = vpack.c.bf16 %v2140_v62, %v2140_v62 }
 0x94a   : > { %2218 = vmatmul.bf16.vlgmr.msra.gmra.mxu1 %v2141_v47 }
 0x94b   : > { %v2138_v51 = vpop.f32.mrf.mxu0 }
 0x9c7   : > { %v2219_v60 = vpop.f32.mrf.mxu1 }
 0x9c8   : > { %v2220_v4 = vadd.f32 %v2775_v3, %v2219_v60 }
 0x9ca   : > { %v2223_v5 = vmax.f32 %v2220_v4, 0.0 }
 0x9cc   : > { %v2224_v6 = vpack.c.bf16 %v2223_v5, %v2223_v5 }
 0x9ce   : > { %2599 = vmatmul.msk.bf16.vlgmr.msra.gmra.mxu2 %vm1926_vm5, %v2224_v6 }
 0x9cf   : > { %v2221_v27 = vpop.f32.mrf.mxu1 }
 0xa51   : > { %v2273_v8 = vpop.f32.mrf.mxu2 }
 0xa52   : > { %v2274_v28 = vadd.f32 %v2776_v7, %v2273_v8 }
 0xa54   : > { %2278 = vst.msk [vmem:[#allocation4] sm:$0x3] %vm2277_vm1, %v2274_v28 }
 0xa59   : > { %v2275_v35 = vpop.f32.mrf.mxu2 }
 0xa5a PF: > { %s3576_s2 = sld [smem:[#allocation8_spill]]  ;;  %s2852_s28 = smov [#allocation4]  }
 0xa5b   : > { %s3578_s26 = sld [smem:[#allocation22_spill]]  ;;  %s2287_s19 = sshll.u32 %s2852_s28, 4  ;;  %s2288_s19 = int_to_ptr.vmem [resolvable:$true] %s2287_s19 }
 0xa60   : > { %s3577_s3 = sadd.s32 4294967295, %s3576_s2  }
 0xa61   : > { %p2636_p7 = scmp.eq.s32.totalorder %s3577_s3, 1  ;;  %s2289_s30 = sshll.u32 %s3578_s26, 4  ;;  %s2290_s30 = int_to_ptr.hbm [resolvable:$true] %s2289_s30 }
 0xa63   : > { %2633 = dma.vmem_to_hbm [thread:$0]  (%p2636_p7), %s2288_s19, 32, %s2290_s30, [#allocation5]  }
 0xa64   : > { %2820 = dma.done.wait (%p2636_p7), [#allocation5], 32  }
 0xa65   : > { %2822 = vsyncadd (%p2636_p7), [#allocation5], 4294967264 }
 0xa66 PF: > { %s3579_s4 = sld [smem:[#allocation8_spill]] }
 0xa67   : > { %s3580_s3 = sld [smem:[#allocation7_spill]] }
 0xa68   : > { %s3581_s28 = sld [smem:[#allocation9_spill]] }
 0xa6c   : > { %s33_s29 = sadd.s32 1, %s3579_s4  }
 0xa6d   : > { %p30_p8 = scmp.ge.s32.totalorder %s33_s29, 4  }
 0xa6f   :  { %32 = sbr.rel (!%p30_p8) target bundleno = 16 (0x10), region = 180 }
 0xa74   :  { %2303 = vsyncpa [#allocation5], 1 }
 0xa75   :  { %2305 = vsyncpa [#allocation5 + $0x1], 1 }

</bundles_post_ra>
